<compile_context>
chip_gen: v5e
topology: v5e:2x2
jax: 0.10.0
libtpu: 0.0.40
codegen_flags: <defaults>
</compile_context>

<pallas_src>
import functools

import jax
import jax.numpy as jnp
import numpy as np
from jax import lax
from jax.experimental import pallas as pl
from jax.experimental.pallas import tpu as pltpu


# -----------------------------------------------------------------------------
# Fused Pallas kernel: whole WN stack for one batch element (grid over B).
# -----------------------------------------------------------------------------
def wn_stack_kernel(x_ref, mask_ref, w_in_ref, b_in_ref, w_rs_ref, b_rs_ref,
                    out_ref, xpad_ref,
                    *, H, T, ksize, dilation_rate, n_layers, pad_max):
    """Channels-first refs (T on lanes).

    x_ref    : (H, T)                   hidden state for this batch element
    mask_ref : (1, T)
    w_in_ref : (L, 2H, k*H)             tap-concatenated dilated-conv weights
    b_in_ref : (L, 2H, 1)
    w_rs_ref : (L, 2H, H)               fused 1x1 res/skip conv (last layer
                                        packed into skip half, residual half=0)
    b_rs_ref : (L, 2H, 1)
    out_ref  : (H, T)                   output = skip_total * mask
    xpad_ref : (H, T + 2*pad_max)       VMEM scratch, zero borders
    """
    # Zero only the left/right halo borders (interior is overwritten next).
    # Re-done every grid step so the kernel is correct under megacore sharding
    # (scratch is per-core; don't rely on a program_id==0 init).
    if pad_max > 0:
        zeros_border = jnp.zeros((H, pad_max), xpad_ref.dtype)
        xpad_ref[:, pl.ds(0, pad_max)] = zeros_border
        xpad_ref[:, pl.ds(pad_max + T, pad_max)] = zeros_border
    xpad_ref[:, pl.ds(pad_max, T)] = x_ref[...]

    mask = mask_ref[...]                                  # (1, T) -> bcast over H
    skip = jnp.zeros((H, T), jnp.float32)                 # register accumulator

    for i in range(n_layers):                             # small, static -> unrolled
        d = dilation_rate ** i
        pad_i = (ksize * d - d) // 2
        last = i == n_layers - 1

        # Dilated conv as ONE matmul: stack the k shifted views on the channel
        # (sublane) axis -> (k*H, T), contract against (2H, k*H).
        x_stack = jnp.concatenate(
            [xpad_ref[:, pl.ds(pad_max - pad_i + j * d, T)] for j in range(ksize)],
            axis=0)                                       # (k*H, T)
        acc = jnp.dot(w_in_ref[i], x_stack,
                      preferred_element_type=jnp.float32) + b_in_ref[i]  # (2H, T)

        # fused_add_tanh_sigmoid_multiply (g is None -> g_l = 0); dropout p=0.
        acts = jnp.tanh(acc[:H, :]) * jax.nn.sigmoid(acc[H:, :])         # (H, T)

        # Fused 1x1 residual + skip conv.
        rs = jnp.dot(w_rs_ref[i], acts,
                     preferred_element_type=jnp.float32) + b_rs_ref[i]   # (2H, T)

        if not last:                                      # residual update (masked)
            x_cur = xpad_ref[:, pl.ds(pad_max, T)]
            xpad_ref[:, pl.ds(pad_max, T)] = (x_cur + rs[:H, :]) * mask
        skip = skip + rs[H:, :]                           # skip accumulation

    out_ref[...] = (skip * mask).astype(out_ref.dtype)    # final `output * x_mask`


# -----------------------------------------------------------------------------
# Wrapper: single pallas_call, grid over batch ("parallel").
# -----------------------------------------------------------------------------
def wn_forward(x_bct, mask_bct, packed, *, hidden_channels, kernel_size,
               dilation_rate, n_layers):
    """x_bct: (B, H, T) like PyTorch Conv1d layout; returns (B, H, T)."""
    H = hidden_channels
    B, _, T = x_bct.shape
    w_in_all, b_in_all, w_rs_all, b_rs_all = packed
    pad_max = (kernel_size - 1) * dilation_rate ** (n_layers - 1) // 2

    kern = functools.partial(wn_stack_kernel, H=H, T=T, ksize=kernel_size,
                             dilation_rate=dilation_rate, n_layers=n_layers,
                             pad_max=pad_max)

    def full_spec(shape):
        # Grid-invariant block -> DMA'd once, stays resident in VMEM.
        return pl.BlockSpec(shape, lambda b: (0,) * len(shape))

    return pl.pallas_call(
        kern,
        out_shape=jax.ShapeDtypeStruct((B, H, T), jnp.float32),
        grid=(B,),
        in_specs=[
            pl.BlockSpec((None, H, T), lambda b: (b, 0, 0)),   # x
            pl.BlockSpec((None, 1, T), lambda b: (b, 0, 0)),   # mask
            full_spec(w_in_all.shape),                         # weights: resident
            full_spec(b_in_all.shape),
            full_spec(w_rs_all.shape),
            full_spec(b_rs_all.shape),
        ],
        out_specs=pl.BlockSpec((None, H, T), lambda b: (b, 0, 0)),
        scratch_shapes=[pltpu.VMEM((H, T + 2 * pad_max), jnp.float32)],
        compiler_params=pltpu.CompilerParams(
            dimension_semantics=("parallel",)),
    )(x_bct.astype(jnp.float32), mask_bct.astype(jnp.float32),
      w_in_all, b_in_all, w_rs_all, b_rs_all)


# -----------------------------------------------------------------------------
# One-time weight packing into kernel layout (done at param-build time).
# -----------------------------------------------------------------------------
def pack_params(params, *, hidden_channels, kernel_size, n_layers):
    H = hidden_channels
    w_in_l, b_in_l, w_rs_l, b_rs_l = [], [], [], []
    for i, (w_in, b_in, w_rs, b_rs) in enumerate(params):
        # (2H, H, k) -> (2H, k*H), columns ordered tap-major (j*H + channel).
        w_in_l.append(jnp.transpose(w_in, (0, 2, 1)).reshape(2 * H, kernel_size * H))
        b_in_l.append(b_in.reshape(2 * H, 1))
        w = w_rs[:, :, 0]                       # (c_rs, H)
        b = b_rs
        if i == n_layers - 1:                   # last layer: H outputs -> skip half
            w = jnp.concatenate([jnp.zeros((H, H), w.dtype), w], axis=0)
            b = jnp.concatenate([jnp.zeros((H,), b.dtype), b], axis=0)
        w_rs_l.append(w)
        b_rs_l.append(b.reshape(2 * H, 1))
    return (jnp.stack(w_in_l).astype(jnp.float32),
            jnp.stack(b_in_l).astype(jnp.float32),
            jnp.stack(w_rs_l).astype(jnp.float32),
            jnp.stack(b_rs_l).astype(jnp.float32))


# -----------------------------------------------------------------------------
# Deterministic parameter construction (weight-norm parametrization applied in
# JAX glue, matching PyTorch's fresh-init semantics where w = g * v / ||v||).
# -----------------------------------------------------------------------------
def make_params(key, hidden_channels, kernel_size, n_layers):
    H = hidden_channels
    params = []
    for i in range(n_layers):
        key, k1, k2, k3, k4 = jax.random.split(key, 5)

        fan_in = H * kernel_size
        bound = 1.0 / np.sqrt(fan_in)
        v_in = jax.random.uniform(k1, (2 * H, H, kernel_size),
                                  minval=-bound, maxval=bound,
                                  dtype=jnp.float32)
        norm_in = jnp.sqrt(jnp.sum(v_in.reshape(2 * H, -1) ** 2, axis=1))
        g_in = norm_in                                   # fresh weight_norm: g=||v||
        w_in = v_in * (g_in / norm_in)[:, None, None]
        b_in = jax.random.uniform(k2, (2 * H,), minval=-bound, maxval=bound,
                                  dtype=jnp.float32)

        c_rs = 2 * H if i < n_layers - 1 else H
        bound_rs = 1.0 / np.sqrt(H)
        v_rs = jax.random.uniform(k3, (c_rs, H, 1), minval=-bound_rs,
                                  maxval=bound_rs, dtype=jnp.float32)
        norm_rs = jnp.sqrt(jnp.sum(v_rs.reshape(c_rs, -1) ** 2, axis=1))
        w_rs = v_rs * (norm_rs / norm_rs)[:, None, None]
        b_rs = jax.random.uniform(k4, (c_rs,), minval=-bound_rs,
                                  maxval=bound_rs, dtype=jnp.float32)

        params.append((w_in, b_in, w_rs, b_rs))
    return params


# -----------------------------------------------------------------------------
# Pure-JAX reference (mirrors the PyTorch forward, in NCT layout).
# -----------------------------------------------------------------------------
def wn_reference(x, x_mask, params, *, hidden_channels, kernel_size,
                 dilation_rate, n_layers):
    H = hidden_channels
    output = jnp.zeros_like(x)

    def conv1d(inp, w, b, dilation, pad):
        y = lax.conv_general_dilated(
            inp, w, window_strides=(1,), padding=[(pad, pad)],
            rhs_dilation=(dilation,), dimension_numbers=('NCH', 'OIH', 'NCH'))
        return y + b[None, :, None]

    for i in range(n_layers):
        dilation = dilation_rate ** i
        pad = (kernel_size * dilation - dilation) // 2
        w_in, b_in, w_rs, b_rs = params[i]
        x_in = conv1d(x, w_in, b_in, dilation, pad)
        acts = jnp.tanh(x_in[:, :H, :]) * jax.nn.sigmoid(x_in[:, H:, :])
        rs = conv1d(acts, w_rs, b_rs, 1, 0)
        if i < n_layers - 1:
            x = (x + rs[:, :H, :]) * x_mask
            output = output + rs[:, H:, :]
        else:
            output = output + rs
    return output * x_mask


# -----------------------------------------------------------------------------
if __name__ == "__main__":
    # Module hyperparameters (small, consistent with WN).
    hidden_channels = 32
    kernel_size = 3
    dilation_rate = 2
    n_layers = 3
    # gin_channels = 0 -> no cond_layer / g path (g is None in forward).

    B, T = 2, 128          # T = 128 -> lane-dense (unmasked) output stores
    key = jax.random.PRNGKey(0)
    key, kx, kp = jax.random.split(key, 3)

    x = jax.random.normal(kx, (B, hidden_channels, T), dtype=jnp.float32)
    # mask: last few timesteps of batch element 1 are padding.
    mask_np = np.ones((B, 1, T), dtype=np.float32)
    mask_np[1, 0, T - 17:] = 0.0
    x_mask = jnp.asarray(mask_np)

    params = make_params(kp, hidden_channels, kernel_size, n_layers)
    packed = pack_params(params, hidden_channels=hidden_channels,
                         kernel_size=kernel_size, n_layers=n_layers)

    out = wn_forward(x, x_mask, packed,
                     hidden_channels=hidden_channels,
                     kernel_size=kernel_size,
                     dilation_rate=dilation_rate,
                     n_layers=n_layers)
    out = jax.block_until_ready(out)

    ref = wn_reference(x, x_mask, params,
                       hidden_channels=hidden_channels,
                       kernel_size=kernel_size,
                       dilation_rate=dilation_rate,
                       n_layers=n_layers)
    ref = jax.block_until_ready(ref)

    np.testing.assert_allclose(np.asarray(out), np.asarray(ref),
                               rtol=1e-2, atol=1e-3)
    print("KERNEL_OK")
</pallas_src>

<mosaic_0001>
module attributes {stable_mosaic.version = 11 : i64} {
  func.func @wn_stack_kernel(%arg0: i32, %arg1: memref<1x32x128xf32, #tpu.memory_space<vmem>>, %arg2: memref<1x1x128xf32, #tpu.memory_space<vmem>>, %arg3: memref<3x64x96xf32, #tpu.memory_space<vmem>>, %arg4: memref<3x64x1xf32, #tpu.memory_space<vmem>>, %arg5: memref<3x64x32xf32, #tpu.memory_space<vmem>>, %arg6: memref<3x64x1xf32, #tpu.memory_space<vmem>>, %arg7: memref<1x32x128xf32, #tpu.memory_space<vmem>>, %arg8: memref<32x136xf32, #tpu.memory_space<vmem>>) attributes {dimension_semantics = [#tpu.dimension_semantics<parallel>], iteration_bounds = array<i64: 2>, scalar_prefetch = 0 : i64, scratch_operands = 1 : i64, tpu.core_type = #tpu.core_type<tc>, window_params = [{transform_indices = @transform_0, window_bounds = array<i64: 1, 32, 128>}, {transform_indices = @transform_1, window_bounds = array<i64: 1, 1, 128>}, {pipeline_mode = #tpu.pipeline_mode<synchronous>, transform_indices = @transform_2, window_bounds = array<i64: 3, 64, 96>}, {pipeline_mode = #tpu.pipeline_mode<synchronous>, transform_indices = @transform_3, window_bounds = array<i64: 3, 64, 1>}, {pipeline_mode = #tpu.pipeline_mode<synchronous>, transform_indices = @transform_4, window_bounds = array<i64: 3, 64, 32>}, {pipeline_mode = #tpu.pipeline_mode<synchronous>, transform_indices = @transform_5, window_bounds = array<i64: 3, 64, 1>}, {transform_indices = @transform_6, window_bounds = array<i64: 1, 32, 128>}]} {
    %cst = arith.constant 0.000000e+00 : f32
    %0 = vector.broadcast %cst : f32 to vector<32x4xf32>
    %c0 = arith.constant 0 : index
    %c0_0 = arith.constant 0 : index
    %1 = vector.load %arg8[%c0, %c0_0] : memref<32x136xf32, #tpu.memory_space<vmem>>, vector<32x4xf32>
    tpu.vector_store %arg8[%c0, %c0_0], %0 {strides = array<i32>} : memref<32x136xf32, #tpu.memory_space<vmem>>, vector<32x4xf32>,
    %c0_1 = arith.constant 0 : index
    %c132 = arith.constant 132 : index
    %2 = vector.load %arg8[%c0_1, %c132] : memref<32x136xf32, #tpu.memory_space<vmem>>, vector<32x4xf32>
    tpu.vector_store %arg8[%c0_1, %c132], %0 {strides = array<i32>} : memref<32x136xf32, #tpu.memory_space<vmem>>, vector<32x4xf32>,
    %c0_2 = arith.constant 0 : index
    %c0_3 = arith.constant 0 : index
    %c0_4 = arith.constant 0 : index
    %3 = vector.load %arg1[%c0_2, %c0_3, %c0_4] : memref<1x32x128xf32, #tpu.memory_space<vmem>>, vector<1x32x128xf32>
    %4 = vector.shape_cast %3 : vector<1x32x128xf32> to vector<32x128xf32>
    %c0_5 = arith.constant 0 : index
    %c4 = arith.constant 4 : index
    %5 = vector.load %arg8[%c0_5, %c4] : memref<32x136xf32, #tpu.memory_space<vmem>>, vector<32x128xf32>
    tpu.vector_store %arg8[%c0_5, %c4], %4 {strides = array<i32>} : memref<32x136xf32, #tpu.memory_space<vmem>>, vector<32x128xf32>,
    %c0_6 = arith.constant 0 : index
    %c0_7 = arith.constant 0 : index
    %c0_8 = arith.constant 0 : index
    %6 = vector.load %arg2[%c0_6, %c0_7, %c0_8] : memref<1x1x128xf32, #tpu.memory_space<vmem>>, vector<1x1x128xf32>
    %7 = vector.shape_cast %6 : vector<1x1x128xf32> to vector<1x128xf32>
    %cst_9 = arith.constant 0.000000e+00 : f32
    %8 = vector.broadcast %cst_9 : f32 to vector<32x128xf32>
    %c0_10 = arith.constant 0 : index
    %c3 = arith.constant 3 : index
    %9 = vector.load %arg8[%c0_10, %c3] : memref<32x136xf32, #tpu.memory_space<vmem>>, vector<32x128xf32>
    %c0_11 = arith.constant 0 : index
    %c4_12 = arith.constant 4 : index
    %10 = vector.load %arg8[%c0_11, %c4_12] : memref<32x136xf32, #tpu.memory_space<vmem>>, vector<32x128xf32>
    %c0_13 = arith.constant 0 : index
    %c5 = arith.constant 5 : index
    %11 = vector.load %arg8[%c0_13, %c5] : memref<32x136xf32, #tpu.memory_space<vmem>>, vector<32x128xf32>
    %12 = tpu.concatenate %9, %10, %11 in 0 : vector<32x128xf32>, vector<32x128xf32>, vector<32x128xf32> -> vector<96x128xf32>
    %c0_14 = arith.constant 0 : index
    %c0_15 = arith.constant 0 : index
    %c0_16 = arith.constant 0 : index
    %13 = vector.load %arg3[%c0_14, %c0_15, %c0_16] : memref<3x64x96xf32, #tpu.memory_space<vmem>>, vector<1x64x96xf32>
    %14 = vector.shape_cast %13 : vector<1x64x96xf32> to vector<64x96xf32>
    %cst_17 = arith.constant dense<0.000000e+00> : vector<64x128xf32>
    %15 = tpu.matmul %14, %12, %cst_17 {dimension_numbers = #tpu.dot_dimension_numbers<[1], [0], [0], [1], [0, 0, 1, 1], [], []>} : vector<64x96xf32>, vector<96x128xf32>, vector<64x128xf32> -> vector<64x128xf32>
    %c0_18 = arith.constant 0 : index
    %c0_19 = arith.constant 0 : index
    %c0_20 = arith.constant 0 : index
    %16 = vector.load %arg4[%c0_18, %c0_19, %c0_20] : memref<3x64x1xf32, #tpu.memory_space<vmem>>, vector<1x64x1xf32>
    %17 = vector.shape_cast %16 : vector<1x64x1xf32> to vector<64x1xf32>
    %18 = vector.broadcast %17 : vector<64x1xf32> to vector<64x128xf32>
    %19 = arith.addf %15, %18 : vector<64x128xf32>
    %20 = vector.extract_strided_slice %19 {offsets = [0, 0], sizes = [32, 128], strides = [1, 1]} : vector<64x128xf32> to vector<32x128xf32>
    %21 = math.tanh %20 : vector<32x128xf32>
    %22 = vector.extract_strided_slice %19 {offsets = [32, 0], sizes = [32, 128], strides = [1, 1]} : vector<64x128xf32> to vector<32x128xf32>
    %23 = arith.negf %22 : vector<32x128xf32>
    %24 = math.exp %23 : vector<32x128xf32>
    %cst_21 = arith.constant 1.000000e+00 : f32
    %25 = vector.broadcast %cst_21 : f32 to vector<32x128xf32>
    %26 = arith.addf %25, %24 : vector<32x128xf32>
    %27 = arith.divf %25, %26 : vector<32x128xf32>
    %28 = arith.mulf %21, %27 : vector<32x128xf32>
    %c0_22 = arith.constant 0 : index
    %c0_23 = arith.constant 0 : index
    %c0_24 = arith.constant 0 : index
    %29 = vector.load %arg5[%c0_22, %c0_23, %c0_24] : memref<3x64x32xf32, #tpu.memory_space<vmem>>, vector<1x64x32xf32>
    %30 = vector.shape_cast %29 : vector<1x64x32xf32> to vector<64x32xf32>
    %cst_25 = arith.constant dense<0.000000e+00> : vector<64x128xf32>
    %31 = tpu.matmul %30, %28, %cst_25 {dimension_numbers = #tpu.dot_dimension_numbers<[1], [0], [0], [1], [0, 0, 1, 1], [], []>} : vector<64x32xf32>, vector<32x128xf32>, vector<64x128xf32> -> vector<64x128xf32>
    %c0_26 = arith.constant 0 : index
    %c0_27 = arith.constant 0 : index
    %c0_28 = arith.constant 0 : index
    %32 = vector.load %arg6[%c0_26, %c0_27, %c0_28] : memref<3x64x1xf32, #tpu.memory_space<vmem>>, vector<1x64x1xf32>
    %33 = vector.shape_cast %32 : vector<1x64x1xf32> to vector<64x1xf32>
    %34 = vector.broadcast %33 : vector<64x1xf32> to vector<64x128xf32>
    %35 = arith.addf %31, %34 : vector<64x128xf32>
    %c0_29 = arith.constant 0 : index
    %c4_30 = arith.constant 4 : index
    %36 = vector.load %arg8[%c0_29, %c4_30] : memref<32x136xf32, #tpu.memory_space<vmem>>, vector<32x128xf32>
    %37 = vector.extract_strided_slice %35 {offsets = [0, 0], sizes = [32, 128], strides = [1, 1]} : vector<64x128xf32> to vector<32x128xf32>
    %38 = arith.addf %36, %37 : vector<32x128xf32>
    %39 = vector.broadcast %7 : vector<1x128xf32> to vector<32x128xf32>
    %40 = arith.mulf %38, %39 : vector<32x128xf32>
    %c0_31 = arith.constant 0 : index
    %c4_32 = arith.constant 4 : index
    %41 = vector.load %arg8[%c0_31, %c4_32] : memref<32x136xf32, #tpu.memory_space<vmem>>, vector<32x128xf32>
    tpu.vector_store %arg8[%c0_31, %c4_32], %40 {strides = array<i32>} : memref<32x136xf32, #tpu.memory_space<vmem>>, vector<32x128xf32>,
    %42 = vector.extract_strided_slice %35 {offsets = [32, 0], sizes = [32, 128], strides = [1, 1]} : vector<64x128xf32> to vector<32x128xf32>
    %43 = arith.addf %8, %42 : vector<32x128xf32>
    %c0_33 = arith.constant 0 : index
    %c2 = arith.constant 2 : index
    %44 = vector.load %arg8[%c0_33, %c2] : memref<32x136xf32, #tpu.memory_space<vmem>>, vector<32x128xf32>
    %c0_34 = arith.constant 0 : index
    %c4_35 = arith.constant 4 : index
    %45 = vector.load %arg8[%c0_34, %c4_35] : memref<32x136xf32, #tpu.memory_space<vmem>>, vector<32x128xf32>
    %c0_36 = arith.constant 0 : index
    %c6 = arith.constant 6 : index
    %46 = vector.load %arg8[%c0_36, %c6] : memref<32x136xf32, #tpu.memory_space<vmem>>, vector<32x128xf32>
    %47 = tpu.concatenate %44, %45, %46 in 0 : vector<32x128xf32>, vector<32x128xf32>, vector<32x128xf32> -> vector<96x128xf32>
    %c1 = arith.constant 1 : index
    %c0_37 = arith.constant 0 : index
    %c0_38 = arith.constant 0 : index
    %48 = vector.load %arg3[%c1, %c0_37, %c0_38] : memref<3x64x96xf32, #tpu.memory_space<vmem>>, vector<1x64x96xf32>
    %49 = vector.shape_cast %48 : vector<1x64x96xf32> to vector<64x96xf32>
    %cst_39 = arith.constant dense<0.000000e+00> : vector<64x128xf32>
    %50 = tpu.matmul %49, %47, %cst_39 {dimension_numbers = #tpu.dot_dimension_numbers<[1], [0], [0], [1], [0, 0, 1, 1], [], []>} : vector<64x96xf32>, vector<96x128xf32>, vector<64x128xf32> -> vector<64x128xf32>
    %c1_40 = arith.constant 1 : index
    %c0_41 = arith.constant 0 : index
    %c0_42 = arith.constant 0 : index
    %51 = vector.load %arg4[%c1_40, %c0_41, %c0_42] : memref<3x64x1xf32, #tpu.memory_space<vmem>>, vector<1x64x1xf32>
    %52 = vector.shape_cast %51 : vector<1x64x1xf32> to vector<64x1xf32>
    %53 = vector.broadcast %52 : vector<64x1xf32> to vector<64x128xf32>
    %54 = arith.addf %50, %53 : vector<64x128xf32>
    %55 = vector.extract_strided_slice %54 {offsets = [0, 0], sizes = [32, 128], strides = [1, 1]} : vector<64x128xf32> to vector<32x128xf32>
    %56 = math.tanh %55 : vector<32x128xf32>
    %57 = vector.extract_strided_slice %54 {offsets = [32, 0], sizes = [32, 128], strides = [1, 1]} : vector<64x128xf32> to vector<32x128xf32>
    %58 = arith.negf %57 : vector<32x128xf32>
    %59 = math.exp %58 : vector<32x128xf32>
    %cst_43 = arith.constant 1.000000e+00 : f32
    %60 = vector.broadcast %cst_43 : f32 to vector<32x128xf32>
    %61 = arith.addf %60, %59 : vector<32x128xf32>
    %62 = arith.divf %60, %61 : vector<32x128xf32>
    %63 = arith.mulf %56, %62 : vector<32x128xf32>
    %c1_44 = arith.constant 1 : index
    %c0_45 = arith.constant 0 : index
    %c0_46 = arith.constant 0 : index
    %64 = vector.load %arg5[%c1_44, %c0_45, %c0_46] : memref<3x64x32xf32, #tpu.memory_space<vmem>>, vector<1x64x32xf32>
    %65 = vector.shape_cast %64 : vector<1x64x32xf32> to vector<64x32xf32>
    %cst_47 = arith.constant dense<0.000000e+00> : vector<64x128xf32>
    %66 = tpu.matmul %65, %63, %cst_47 {dimension_numbers = #tpu.dot_dimension_numbers<[1], [0], [0], [1], [0, 0, 1, 1], [], []>} : vector<64x32xf32>, vector<32x128xf32>, vector<64x128xf32> -> vector<64x128xf32>
    %c1_48 = arith.constant 1 : index
    %c0_49 = arith.constant 0 : index
    %c0_50 = arith.constant 0 : index
    %67 = vector.load %arg6[%c1_48, %c0_49, %c0_50] : memref<3x64x1xf32, #tpu.memory_space<vmem>>, vector<1x64x1xf32>
    %68 = vector.shape_cast %67 : vector<1x64x1xf32> to vector<64x1xf32>
    %69 = vector.broadcast %68 : vector<64x1xf32> to vector<64x128xf32>
    %70 = arith.addf %66, %69 : vector<64x128xf32>
    %c0_51 = arith.constant 0 : index
    %c4_52 = arith.constant 4 : index
    %71 = vector.load %arg8[%c0_51, %c4_52] : memref<32x136xf32, #tpu.memory_space<vmem>>, vector<32x128xf32>
    %72 = vector.extract_strided_slice %70 {offsets = [0, 0], sizes = [32, 128], strides = [1, 1]} : vector<64x128xf32> to vector<32x128xf32>
    %73 = arith.addf %71, %72 : vector<32x128xf32>
    %74 = vector.broadcast %7 : vector<1x128xf32> to vector<32x128xf32>
    %75 = arith.mulf %73, %74 : vector<32x128xf32>
    %c0_53 = arith.constant 0 : index
    %c4_54 = arith.constant 4 : index
    %76 = vector.load %arg8[%c0_53, %c4_54] : memref<32x136xf32, #tpu.memory_space<vmem>>, vector<32x128xf32>
    tpu.vector_store %arg8[%c0_53, %c4_54], %75 {strides = array<i32>} : memref<32x136xf32, #tpu.memory_space<vmem>>, vector<32x128xf32>,
    %77 = vector.extract_strided_slice %70 {offsets = [32, 0], sizes = [32, 128], strides = [1, 1]} : vector<64x128xf32> to vector<32x128xf32>
    %78 = arith.addf %43, %77 : vector<32x128xf32>
    %c0_55 = arith.constant 0 : index
    %c0_56 = arith.constant 0 : index
    %79 = vector.load %arg8[%c0_55, %c0_56] : memref<32x136xf32, #tpu.memory_space<vmem>>, vector<32x128xf32>
    %c0_57 = arith.constant 0 : index
    %c4_58 = arith.constant 4 : index
    %80 = vector.load %arg8[%c0_57, %c4_58] : memref<32x136xf32, #tpu.memory_space<vmem>>, vector<32x128xf32>
    %c0_59 = arith.constant 0 : index
    %c8 = arith.constant 8 : index
    %81 = vector.load %arg8[%c0_59, %c8] : memref<32x136xf32, #tpu.memory_space<vmem>>, vector<32x128xf32>
    %82 = tpu.concatenate %79, %80, %81 in 0 : vector<32x128xf32>, vector<32x128xf32>, vector<32x128xf32> -> vector<96x128xf32>
    %c2_60 = arith.constant 2 : index
    %c0_61 = arith.constant 0 : index
    %c0_62 = arith.constant 0 : index
    %83 = vector.load %arg3[%c2_60, %c0_61, %c0_62] : memref<3x64x96xf32, #tpu.memory_space<vmem>>, vector<1x64x96xf32>
    %84 = vector.shape_cast %83 : vector<1x64x96xf32> to vector<64x96xf32>
    %cst_63 = arith.constant dense<0.000000e+00> : vector<64x128xf32>
    %85 = tpu.matmul %84, %82, %cst_63 {dimension_numbers = #tpu.dot_dimension_numbers<[1], [0], [0], [1], [0, 0, 1, 1], [], []>} : vector<64x96xf32>, vector<96x128xf32>, vector<64x128xf32> -> vector<64x128xf32>
    %c2_64 = arith.constant 2 : index
    %c0_65 = arith.constant 0 : index
    %c0_66 = arith.constant 0 : index
    %86 = vector.load %arg4[%c2_64, %c0_65, %c0_66] : memref<3x64x1xf32, #tpu.memory_space<vmem>>, vector<1x64x1xf32>
    %87 = vector.shape_cast %86 : vector<1x64x1xf32> to vector<64x1xf32>
    %88 = vector.broadcast %87 : vector<64x1xf32> to vector<64x128xf32>
    %89 = arith.addf %85, %88 : vector<64x128xf32>
    %90 = vector.extract_strided_slice %89 {offsets = [0, 0], sizes = [32, 128], strides = [1, 1]} : vector<64x128xf32> to vector<32x128xf32>
    %91 = math.tanh %90 : vector<32x128xf32>
    %92 = vector.extract_strided_slice %89 {offsets = [32, 0], sizes = [32, 128], strides = [1, 1]} : vector<64x128xf32> to vector<32x128xf32>
    %93 = arith.negf %92 : vector<32x128xf32>
    %94 = math.exp %93 : vector<32x128xf32>
    %cst_67 = arith.constant 1.000000e+00 : f32
    %95 = vector.broadcast %cst_67 : f32 to vector<32x128xf32>
    %96 = arith.addf %95, %94 : vector<32x128xf32>
    %97 = arith.divf %95, %96 : vector<32x128xf32>
    %98 = arith.mulf %91, %97 : vector<32x128xf32>
    %c2_68 = arith.constant 2 : index
    %c0_69 = arith.constant 0 : index
    %c0_70 = arith.constant 0 : index
    %99 = vector.load %arg5[%c2_68, %c0_69, %c0_70] : memref<3x64x32xf32, #tpu.memory_space<vmem>>, vector<1x64x32xf32>
    %100 = vector.shape_cast %99 : vector<1x64x32xf32> to vector<64x32xf32>
    %cst_71 = arith.constant dense<0.000000e+00> : vector<64x128xf32>
    %101 = tpu.matmul %100, %98, %cst_71 {dimension_numbers = #tpu.dot_dimension_numbers<[1], [0], [0], [1], [0, 0, 1, 1], [], []>} : vector<64x32xf32>, vector<32x128xf32>, vector<64x128xf32> -> vector<64x128xf32>
    %c2_72 = arith.constant 2 : index
    %c0_73 = arith.constant 0 : index
    %c0_74 = arith.constant 0 : index
    %102 = vector.load %arg6[%c2_72, %c0_73, %c0_74] : memref<3x64x1xf32, #tpu.memory_space<vmem>>, vector<1x64x1xf32>
    %103 = vector.shape_cast %102 : vector<1x64x1xf32> to vector<64x1xf32>
    %104 = vector.broadcast %103 : vector<64x1xf32> to vector<64x128xf32>
    %105 = arith.addf %101, %104 : vector<64x128xf32>
    %106 = vector.extract_strided_slice %105 {offsets = [32, 0], sizes = [32, 128], strides = [1, 1]} : vector<64x128xf32> to vector<32x128xf32>
    %107 = arith.addf %78, %106 : vector<32x128xf32>
    %108 = vector.broadcast %7 : vector<1x128xf32> to vector<32x128xf32>
    %109 = arith.mulf %107, %108 : vector<32x128xf32>
    %c0_75 = arith.constant 0 : index
    %c0_76 = arith.constant 0 : index
    %c0_77 = arith.constant 0 : index
    %110 = vector.load %arg7[%c0_75, %c0_76, %c0_77] : memref<1x32x128xf32, #tpu.memory_space<vmem>>, vector<1x32x128xf32>
    %111 = vector.shape_cast %110 : vector<1x32x128xf32> to vector<32x128xf32>
    %112 = vector.shape_cast %109 : vector<32x128xf32> to vector<1x32x128xf32>
    tpu.vector_store %arg7[%c0_75, %c0_76, %c0_77], %112 {strides = array<i32>} : memref<1x32x128xf32, #tpu.memory_space<vmem>>, vector<1x32x128xf32>,
    return
  }
  func.func @transform_0(%arg0: i32) -> (i32, i32, i32) {
    %c0_i32 = arith.constant 0 : i32
    %c0_i32_0 = arith.constant 0 : i32
    %c0_i32_1 = arith.constant 0 : i32
    return %arg0, %c0_i32, %c0_i32_0 : i32, i32, i32
  }
  func.func @transform_1(%arg0: i32) -> (i32, i32, i32) {
    %c0_i32 = arith.constant 0 : i32
    %c0_i32_0 = arith.constant 0 : i32
    %c0_i32_1 = arith.constant 0 : i32
    return %arg0, %c0_i32, %c0_i32_0 : i32, i32, i32
  }
  func.func @transform_2(%arg0: i32) -> (i32, i32, i32) {
    %c0_i32 = arith.constant 0 : i32
    %c0_i32_0 = arith.constant 0 : i32
    %c0_i32_1 = arith.constant 0 : i32
    %c0_i32_2 = arith.constant 0 : i32
    return %c0_i32, %c0_i32_0, %c0_i32_1 : i32, i32, i32
  }
  func.func @transform_3(%arg0: i32) -> (i32, i32, i32) {
    %c0_i32 = arith.constant 0 : i32
    %c0_i32_0 = arith.constant 0 : i32
    %c0_i32_1 = arith.constant 0 : i32
    %c0_i32_2 = arith.constant 0 : i32
    return %c0_i32, %c0_i32_0, %c0_i32_1 : i32, i32, i32
  }
  func.func @transform_4(%arg0: i32) -> (i32, i32, i32) {
    %c0_i32 = arith.constant 0 : i32
    %c0_i32_0 = arith.constant 0 : i32
    %c0_i32_1 = arith.constant 0 : i32
    %c0_i32_2 = arith.constant 0 : i32
    return %c0_i32, %c0_i32_0, %c0_i32_1 : i32, i32, i32
  }
  func.func @transform_5(%arg0: i32) -> (i32, i32, i32) {
    %c0_i32 = arith.constant 0 : i32
    %c0_i32_0 = arith.constant 0 : i32
    %c0_i32_1 = arith.constant 0 : i32
    %c0_i32_2 = arith.constant 0 : i32
    return %c0_i32, %c0_i32_0, %c0_i32_1 : i32, i32, i32
  }
  func.func @transform_6(%arg0: i32) -> (i32, i32, i32) {
    %c0_i32 = arith.constant 0 : i32
    %c0_i32_0 = arith.constant 0 : i32
    %c0_i32_1 = arith.constant 0 : i32
    return %arg0, %c0_i32, %c0_i32_0 : i32, i32, i32
  }
}

</mosaic_0001>

<bundles_post_ra>
// kernel: tpu_custom_call.1
= control target key start
LH: loop header
LB: loop body
LE: loop exit
PB: predicated region body
PF: predicated region fallthrough
CT: control target
= control target key end

     0   :  { %11 = vsyncpa [#allocation4], 0  ;;  %s3258_s0 = inlined_call_operand.vmem [shape: f32[2,32,128], index: 0, kind: input, shape index: {}]   ;;  %s3259_s1 = inlined_call_operand.vmem [shape: f32[2,1,128], index: 1, kind: input, shape index: {}]   ;;  %s3260_s2 = inlined_call_operand.vmem [shape: f32[3,64,96], index: 2, kind: input, shape index: {}]   ;;  %s3261_s3 = inlined_call_operand.vmem [shape: f32[3,64,1], index: 3, kind: input, shape index: {}]   ;;  %s3262_s4 = inlined_call_operand.vmem [shape: f32[3,64,32], index: 4, kind: input, shape index: {}]   ;;  %s3263_s5 = inlined_call_operand.vmem [shape: f32[3,64,1], index: 5, kind: input, shape index: {}]   ;;  %s3264_s6 = inlined_call_operand.hbm [shape: f32[2,32,128], index: 6, kind: output, shape index: {}]  }
   0x1   :  { %13 = vsyncpa [#allocation4 + $0x1], 0  ;;  %s2383_s21 = smov 0   ;;  %s2385_s22 = smov 0  }
   0x2   :  { %s2387_s23 = smov 0   ;;  %s2389_s24 = smov 0  }
   0x3 LB: > { %s2404_s25 = sadd.s32 4294967295, %s2336_s24   ;;  %s1782_s26 = sadd.s32 4294967294, %s2336_s24   ;;  %s2336_s24 = sphi %s2389_s24, %s3282_s24   ;;  %s2332_s23 = sphi %s2387_s23, %s3281_s23   ;;  %s2328_s22 = sphi %s2385_s22, %s3280_s22   ;;  %s2324_s21 = sphi %s2383_s21, %s3279_s21  }
   0x4   : > { %s2408_s27 = sadd.s32 1, %s2336_s24   ;;  %s162_s28 = sadd.s32 1, %s2332_s23 }
   0x5   : > { %s159_s29 = ssub.s32 %s2336_s24, %s2408_s27  ;;  %p172_p0 = scmp.ne.s32.totalorder %s2332_s23, %s2328_s22 }
   0x6   : > { %p160_p1 = scmp.eq.s32.totalorder %s159_s29, 0  ;;  %p173_p2 = scmp.eq.s32.totalorder %s2404_s25, 1 }
   0x7   : > { %p178_p3 = scmp.ne.s32.totalorder %s2328_s22, %s2324_s21  ;;  %p179_p4 = scmp.eq.s32.totalorder %s1782_s26, 1 }
   0x8   : > { %s2419_s30 = scalar_select %p160_p1, %s2332_s23, %s162_s28  }
   0x9   : > { %p2421_p5 = por %p173_p2, %p172_p0  ;;  %p2425_p6 = por %p179_p4, %p178_p3 }
   0xa   : > { %p1785_p7 = scmp.ge.s32.totalorder %s2336_s24, 1  ;;  %p223_p8 = scmp.lt.s32.totalorder %s2336_s24, 3 }
   0xc   : > { %p224_p9 = pnand %p1785_p7, %p223_p8 }
   0xd   : > { %p256_p10 = scmp.lt.s32.totalorder (!%p224_p9), %s2404_s25, 1  ;;  %s2339_s17 = smov (!%p224_p9), 4  }
   0xe   : > { %227 = sbr.rel (%p224_p9) target bundleno = 2210 (0x8a2), region = 44  ;;  %s2340_s18 = smov (!%p224_p9), 126  }
   0xf   : > { %s2341_s19 = smov (!%p224_p9), 127   ;;  %s2342_s20 = smov (!%p224_p9), 125  }
  0x10   : > { %s2344_s26 = smov (!%p224_p9), 124  }
  0x13   : > { %vm264_vm0 = vcmask 31744   ;;  %vm269_vm1 = vcmask 64544   ;;  %v2338_v0 = vmov 0.0   ;;  %s257_s9 = scalar_select %p256_p10, %s2404_s25, 1  ;;  %vm294_vm2 = vcmask 1047584  }
  0x14   : > { %268 = vst.msk [vmem:[#allocation2 + $0x30] sm:$0xff] %vm264_vm0, %v2338_v0  ;;  %vm357_vm3 = vcmask 1031168   ;;  %vm336_vm4 = vcmask 1039360   ;;  %vm466_vm5 = vcmask 1022976   ;;  %vm491_vm6 = vcmask 785408  }
  0x15   : > { %273 = vst.msk [vmem:[#allocation2 + $0x38] sm:$0xff] %vm269_vm1, %v2338_v0  ;;  %s1918_s10 = sshll.u32 %s257_s9, 5  ;;  %s2439_s13 = scalar_lea.vmem %s3259_s1, %s257_s9 }
  0x16   : > { %265 = vst.msk [vmem:[#allocation2] sm:$0xff] %vm264_vm0, %v2338_v0  ;;  %s260_s16 = scalar_lea.vmem %s3258_s0, %s1918_s10 }
  0x17   : > { %266 = vst.msk [vmem:[#allocation2 + $0x10] sm:$0xff] %vm264_vm0, %v2338_v0  ;;  %v277_v1 = vld [vmem:[%s260_s16 + $0x18] sm:$0xff]  ;;  %v275_v2 = vld [vmem:[%s260_s16 + $0x8] sm:$0xff]  ;;  %v276_v3 = vld [vmem:[%s260_s16 + $0x10] sm:$0xff] }
  0x18   : > { %267 = vst.msk [vmem:[#allocation2 + $0x20] sm:$0xff] %vm264_vm0, %v2338_v0  ;;  %288 = vrot.lane.b32.xlu0 %v277_v1, %s2339_s17  ;;  %284 = vrot.lane.b32.xlu1 %v275_v2, %s2339_s17  ;;  %v274_v4 = vld [vmem:[%s260_s16] sm:$0xff] }
  0x19   : > { %270 = vst.msk [vmem:[#allocation2 + $0x8] sm:$0xff] %vm269_vm1, %v2338_v0 }
  0x1a   : > { %271 = vst.msk [vmem:[#allocation2 + $0x18] sm:$0xff] %vm269_vm1, %v2338_v0 }
  0x1b   : > { %272 = vst.msk [vmem:[#allocation2 + $0x28] sm:$0xff] %vm269_vm1, %v2338_v0 }
  0x20   : > { %286 = vrot.lane.b32.xlu0 %v276_v3, %s2339_s17  ;;  %282 = vrot.lane.b32.xlu1 %v274_v4, %s2339_s17 }
  0x8a   : > { %v289_v5 = vpop.permute.xlu0 %288  ;;  %v285_v6 = vpop.permute.xlu1 %284 }
  0x8b   : > { %301 = vst.msk [vmem:[#allocation2 + $0x30] sm:$0xff] %vm294_vm2, %v289_v5 }
  0x8c   : > { %302 = vst.msk [vmem:[#allocation2 + $0x38] sm:$0xff] %vm264_vm0, %v289_v5 }
  0x8d   : > { %297 = vst.msk [vmem:[#allocation2 + $0x10] sm:$0xff] %vm294_vm2, %v285_v6 }
  0x8e   : > { %298 = vst.msk [vmem:[#allocation2 + $0x18] sm:$0xff] %vm264_vm0, %v285_v6 }
  0x92   : > { %v287_v7 = vpop.permute.xlu0 %286  ;;  %v283_v8 = vpop.permute.xlu1 %282  ;;  %v2457_v9 = vld [vmem:[#allocation2 + $0x30] sm:$0xff] }
  0x93   : > { %299 = vst.msk [vmem:[#allocation2 + $0x20] sm:$0xff] %vm294_vm2, %v287_v7  ;;  %v2460_v10 = vld [vmem:[#allocation2 + $0x38] sm:$0xff] }
  0x94   : > { %300 = vst.msk [vmem:[#allocation2 + $0x28] sm:$0xff] %vm264_vm0, %v287_v7  ;;  %v2465_v11 = vpack.i.bf16 %v2460_v10, %v2457_v9  ;;  %v2467_v12 = vld [vmem:[#allocation2 + $0x10] sm:$0xff] }
  0x95   : > { %295 = vst.msk [vmem:[#allocation2] sm:$0xff] %vm294_vm2, %v283_v8  ;;  %v2470_v13 = vld [vmem:[#allocation2 + $0x18] sm:$0xff] }
  0x96   : > { %296 = vst.msk [vmem:[#allocation2 + $0x8] sm:$0xff] %vm264_vm0, %v283_v8  ;;  %1978 = vrot.lane.b32.xlu2 %v2465_v11, %s2340_s18  ;;  %v1987_v14 = vpack.i.bf16 %v2470_v13, %v2467_v12 }
  0x98   : > { %1988 = vrot.lane.b32.xlu0 %v1987_v14, %s2340_s18 }
  0x9a   : > { %v2478_v15 = vld [vmem:[#allocation2 + $0x20] sm:$0xff] }
  0x9b   : > { %v2480_v16 = vld [vmem:[#allocation2 + $0x28] sm:$0xff] }
  0x9c   : > { %v2484_v17 = vpack.i.bf16 %v2480_v16, %v2478_v15  ;;  %v2486_v18 = vld [vmem:[#allocation2] sm:$0xff] }
  0x9d   : > { %v2488_v19 = vld [vmem:[#allocation2 + $0x8] sm:$0xff] }
  0x9e   : > { %1983 = vrot.lane.b32.xlu2 %v2484_v17, %s2340_s18  ;;  %v1992_v20 = vpack.i.bf16 %v2488_v19, %v2486_v18 }
  0xa0   : > { %2003 = vrot.lane.b32.xlu0 %v2484_v17, %s2341_s19  ;;  %1993 = vrot.lane.b32.xlu1 %v1992_v20, %s2340_s18 }
  0xa6   : > { %1998 = vrot.lane.b32.xlu2 %v2465_v11, %s2341_s19 }
  0xa8   : > { %2008 = vrot.lane.b32.xlu1 %v1987_v14, %s2341_s19 }
  0xae   : > { %2013 = vrot.lane.b32.xlu2 %v1992_v20, %s2341_s19  ;;  %s2345_s19 = smov 120  }
  0xf0   : > { %v1979_v21 = vpop.permute.xlu2 %1978 }
  0xf1   : > { %v1981_v22 = vunpack.i.h.bf16 %v1979_v21  ;;  %v1980_v23 = vunpack.i.l.bf16 %v1979_v21 }
  0xf3   : > { %v361_v24 = vsel %vm357_vm3, %v1980_v23, %v1981_v22 }
  0xf4   : > { %v2017_v25 = vpack.i.bf16 %v1981_v22, %v361_v24 }
  0xf6   : > { %2018 = vrot.lane.b32.xlu0 %v2017_v25, %s2342_s20 }
  0xf8   : > { %v1984_v26 = vpop.permute.xlu2 %1983 }
  0xf9   : > { %v1986_v27 = vunpack.i.h.bf16 %v1984_v26  ;;  %v1985_v28 = vunpack.i.l.bf16 %v1984_v26  ;;  %v374_v26 = vld [vmem:[%s3261_s3 + $0x20] sm:$0xff] }
  0xfb   : > { %v360_v29 = vsel %vm357_vm3, %v1985_v28, %v1986_v27 }
  0xfc   : > { %v2022_v30 = vpack.i.bf16 %v1986_v27, %v360_v29 }
  0xfe   : > { %2023 = vrot.lane.b32.xlu1 %v2022_v30, %s2342_s20 }
 0x100   : > { %v1999_v31 = vpop.permute.xlu2 %1998 }
 0x101   : > { %v2001_v32 = vunpack.i.h.bf16 %v1999_v31  ;;  %v2000_v33 = vunpack.i.l.bf16 %v1999_v31 }
 0x103   : > { %v340_v34 = vsel %vm336_vm4, %v2000_v33, %v2001_v32 }
 0x104   : > { %v2037_v35 = vpack.i.bf16 %v2001_v32, %v340_v34 }
 0x106   : > { %2038 = vrot.lane.b32.xlu1 %v2037_v35, %s2342_s20 }
 0x108   : > { %v2014_v36 = vpop.permute.xlu2 %2013 }
 0x109   : > { %v2016_v37 = vunpack.i.h.bf16 %v2014_v36  ;;  %v2015_v38 = vunpack.i.l.bf16 %v2014_v36 }
 0x10a   : > { %v1989_v39 = vpop.permute.xlu0 %1988 }
 0x10b   : > { %v1991_v40 = vunpack.i.h.bf16 %v1989_v39  ;;  %v1990_v41 = vunpack.i.l.bf16 %v1989_v39  ;;  %v337_v42 = vsel %vm336_vm4, %v2015_v38, %v2016_v37  ;;  %v375_v39 = vld [vmem:[%s3261_s3 + $0x28] sm:$0xff] }
 0x10c   : > { %v2062_v43 = vpack.i.bf16 %v2016_v37, %v337_v42 }
 0x10d   : > { %v359_v44 = vsel %vm357_vm3, %v1990_v41, %v1991_v40  ;;  %v377_v41 = vld [vmem:[%s3261_s3 + $0x38] sm:$0xff] }
 0x10e   : > { %v2027_v45 = vpack.i.bf16 %v1991_v40, %v359_v44  ;;  %2063 = vrot.lane.b32.xlu1 %v2062_v43, %s2342_s20  ;;  %v371_v40 = vld [vmem:[%s3261_s3 + $0x8] sm:$0xff] }
 0x110   : > { %2028 = vrot.lane.b32.xlu2 %v2027_v45, %s2342_s20 }
 0x112   : > { %v2004_v46 = vpop.permute.xlu0 %2003  ;;  %v1994_v47 = vpop.permute.xlu1 %1993 }
 0x113   : > { %v2006_v48 = vunpack.i.h.bf16 %v2004_v46  ;;  %v2005_v49 = vunpack.i.l.bf16 %v2004_v46  ;;  %v1996_v50 = vunpack.i.h.bf16 %v1994_v47  ;;  %v1995_v51 = vunpack.i.l.bf16 %v1994_v47 }
 0x115   : > { %v339_v52 = vsel %vm336_vm4, %v2005_v49, %v2006_v48  ;;  %v358_v53 = vsel %vm357_vm3, %v1995_v51, %v1996_v50 }
 0x116   : > { %v2042_v54 = vpack.i.bf16 %v2006_v48, %v339_v52  ;;  %v2032_v55 = vpack.i.bf16 %v1996_v50, %v358_v53  ;;  %2068 = vrot.lane.b32.xlu1 %v1987_v14, %s2342_s20 }
 0x118   : > { %2043 = vrot.lane.b32.xlu2 %v2042_v54, %s2342_s20  ;;  %2033 = vrot.lane.b32.xlu0 %v2032_v55, %s2342_s20  ;;  %v373_v54 = vld [vmem:[%s3261_s3 + $0x18] sm:$0xff]  ;;  %v372_v55 = vld [vmem:[%s3261_s3 + $0x10] sm:$0xff] }
 0x11a   : > { %v2009_v56 = vpop.permute.xlu1 %2008 }
 0x11b   : > { %v2011_v57 = vunpack.i.h.bf16 %v2009_v56  ;;  %v2010_v58 = vunpack.i.l.bf16 %v2009_v56 }
 0x11d   : > { %v338_v59 = vsel %vm336_vm4, %v2010_v58, %v2011_v57 }
 0x11e   : > { %v2052_v60 = vpack.i.bf16 %v2011_v57, %v338_v59 }
 0x120   : > { %2048 = vrot.lane.b32.xlu2 %v2465_v11, %s2342_s20  ;;  %2053 = vrot.lane.b32.xlu0 %v2052_v60, %s2342_s20  ;;  %v376_v11 = vld [vmem:[%s3261_s3 + $0x30] sm:$0xff]  ;;  %v362_v60 = vld [vmem:[%s3260_s2] sm:$0xff] }
 0x128   : > { %2073 = vrot.lane.b32.xlu2 %v1992_v20, %s2342_s20  ;;  %2058 = vrot.lane.b32.xlu0 %v2484_v17, %s2342_s20  ;;  %v2343_v17 = vmov 0  }
 0x129   : > { %2078 = vset.pattern.permute.xlu1 %v2343_v17  ;;  %2079 = vset.pattern.permute.xlu2 %v2343_v17 }
 0x12a   : > { %410 = vperm.xlu1 %2078, %v376_v11   ;;  %2077 = vset.pattern.permute.xlu0 %v2343_v17  ;;  %v368_v11 = vld [vmem:[%s3260_s2 + $0x30] sm:$0xff] }
 0x130   : > { %405 = vperm.xlu2 %2079, %v375_v39   ;;  %415 = vperm.xlu0 %2077, %v377_v41  }
 0x132   : > { %400 = vperm.xlu1 %2078, %v374_v26  }
 0x138   : > { %395 = vperm.xlu2 %2079, %v373_v54   ;;  %390 = vperm.xlu0 %2077, %v372_v55  }
 0x13a   : > { %385 = vperm.xlu1 %2078, %v371_v40  }
 0x168   : > { %v2019_v61 = vpop.permute.xlu0 %2018 }
 0x169   : > { %v2021_v62 = vunpack.i.h.bf16 %v2019_v61  ;;  %v2020_v63 = vunpack.i.l.bf16 %v2019_v61 }
 0x16a   : > { %v2029_v1 = vpop.permute.xlu2 %2028 }
 0x16b   : > { %v478_v0 = vsel %vm466_vm5, %v2020_v63, %v2021_v62  ;;  %v2031_v3 = vunpack.i.h.bf16 %v2029_v1  ;;  %v2030_v4 = vunpack.i.l.bf16 %v2029_v1  ;;  %v370_v62 = vld [vmem:[%s3261_s3] sm:$0xff]  ;;  %v363_v63 = vld [vmem:[%s3260_s2 + $0x8] sm:$0xff]  ;;  %v365_v1 = vld [vmem:[%s3260_s2 + $0x18] sm:$0xff] }
 0x16c   : > { %520 = vmatpush.msra.mxu0 %v478_v0  ;;  %380 = vperm.xlu2 %2079, %v370_v62   ;;  %v364_v0 = vld [vmem:[%s3260_s2 + $0x10] sm:$0xff] }
 0x16d   : > { %v476_v8 = vsel %vm466_vm5, %v2030_v4, %v2031_v3  ;;  %v651_v3 = vld [vmem:[%s3263_s5 + $0x10] sm:$0xff]  ;;  %v650_v4 = vld [vmem:[%s3263_s5 + $0x8] sm:$0xff] }
 0x16e   : > { %669 = vperm.xlu1 %2078, %v651_v3  }
 0x170   : > { %v2024_v2 = vpop.permute.xlu1 %2023 }
 0x171   : > { %v2026_v5 = vunpack.i.h.bf16 %v2024_v2  ;;  %v2025_v6 = vunpack.i.l.bf16 %v2024_v2  ;;  %v652_v2 = vld [vmem:[%s3263_s5 + $0x18] sm:$0xff] }
 0x172   : > { %v2044_v20 = vpop.permute.xlu2 %2043  ;;  %674 = vperm.xlu0 %2077, %v652_v2  }
 0x173   : > { %v477_v7 = vsel %vm466_vm5, %v2025_v6, %v2026_v5  ;;  %v2046_v27 = vunpack.i.h.bf16 %v2044_v20  ;;  %v2045_v28 = vunpack.i.l.bf16 %v2044_v20  ;;  %v366_v5 = vld [vmem:[%s3260_s2 + $0x20] sm:$0xff] }
 0x174   : > { %521 = vmatpush.msra.mxu0 %v477_v7  ;;  %664 = vperm.xlu2 %2079, %v650_v4   ;;  %v649_v6 = vld [vmem:[%s3263_s5] sm:$0xff] }
 0x175   : > { %v473_v33 = vsel %vm466_vm5, %v2045_v28, %v2046_v27  ;;  %v2200_v7 = vld [vmem:[%s2439_s13] ss:$0 sm:$0xff] }
 0x176   : > { %522 = vmatpush.msra.mxu0 %v476_v8  ;;  %v367_v8 = vld [vmem:[%s3260_s2 + $0x28] sm:$0xff] }
 0x178   : > { %v2039_v14 = vpop.permute.xlu1 %2038 }
 0x179   : > { %v2041_v22 = vunpack.i.h.bf16 %v2039_v14  ;;  %v2040_v23 = vunpack.i.l.bf16 %v2039_v14  ;;  %v369_v14 = vld [vmem:[%s3260_s2 + $0x38] sm:$0xff] }
 0x17a   : > { %v2049_v32 = vpop.permute.xlu2 %2048  ;;  %659 = vperm.xlu0 %2077, %v649_v6  }
 0x17b   : > { %v474_v31 = vsel %vm466_vm5, %v2040_v23, %v2041_v22  ;;  %v2051_v42 = vunpack.i.h.bf16 %v2049_v32  ;;  %v2050_v43 = vunpack.i.l.bf16 %v2049_v32 }
 0x17d   : > { %v470_v47 = vsel %vm466_vm5, %v2050_v43, %v2051_v42 }
 0x180   : > { %v2064_v30 = vpop.permute.xlu1 %2063 }
 0x181   : > { %v2066_v35 = vunpack.i.h.bf16 %v2064_v30  ;;  %v2065_v36 = vunpack.i.l.bf16 %v2064_v30 }
 0x182   : > { %v2074_v48 = vpop.permute.xlu2 %2073  ;;  %790 = vrot.lane.b32.xlu0 %v2200_v7, %s2339_s17 }
 0x183   : > { %v471_v45 = vsel %vm466_vm5, %v2065_v36, %v2066_v35  ;;  %v2076_v56 = vunpack.i.h.bf16 %v2074_v48  ;;  %v2075_v57 = vunpack.i.l.bf16 %v2074_v48 }
 0x185   : > { %v467_v61 = vsel %vm466_vm5, %v2075_v57, %v2076_v56 }
 0x188   : > { %v2069_v46 = vpop.permute.xlu1 %2068 }
 0x189   : > { %v2071_v50 = vunpack.i.h.bf16 %v2069_v46  ;;  %v2070_v51 = vunpack.i.l.bf16 %v2069_v46 }
 0x18a   : > { %v2034_v21 = vpop.permute.xlu0 %2033  ;;  %v406_v27 = vpop.permute.xlu2 %405 }
 0x18b   : > { %v2036_v24 = vunpack.i.h.bf16 %v2034_v21  ;;  %v2035_v25 = vunpack.i.l.bf16 %v2034_v21  ;;  %v468_v59 = vsel %vm466_vm5, %v2070_v51, %v2071_v50 }
 0x18d   : > { %v475_v29 = vsel %vm466_vm5, %v2035_v25, %v2036_v24 }
 0x18e   : > { %523 = vmatpush.msra.mxu0 %v475_v29 }
 0x190   : > { %524 = vmatpush.msra.mxu0 %v474_v31 }
 0x192   : > { %v2054_v34 = vpop.permute.xlu0 %2053  ;;  %525 = vmatpush.msra.mxu0 %v473_v33  ;;  %v396_v46 = vpop.permute.xlu2 %395 }
 0x193   : > { %v2056_v37 = vunpack.i.h.bf16 %v2054_v34  ;;  %v2055_v38 = vunpack.i.l.bf16 %v2054_v34 }
 0x195   : > { %v472_v44 = vsel %vm466_vm5, %v2055_v38, %v2056_v37 }
 0x196   : > { %526 = vmatpush.msra.mxu0 %v472_v44 }
 0x198   : > { %527 = vmatpush.msra.mxu0 %v471_v45 }
 0x19a   : > { %v2059_v49 = vpop.permute.xlu0 %2058  ;;  %528 = vmatpush.msra.mxu0 %v470_v47 }
 0x19b   : > { %v2061_v52 = vunpack.i.h.bf16 %v2059_v49  ;;  %v2060_v53 = vunpack.i.l.bf16 %v2059_v49 }
 0x19c   : > { %v411_v23 = vpop.permute.xlu1 %410 }
 0x19d   : > { %v469_v58 = vsel %vm466_vm5, %v2060_v53, %v2061_v52 }
 0x19e   : > { %529 = vmatpush.msra.mxu0 %v469_v58 }
 0x1a0   : > { %530 = vmatpush.msra.mxu0 %v468_v59 }
 0x1a2   : > { %531 = vmatpush.msra.mxu0 %v467_v61  ;;  %v416_v38 = vpop.permute.xlu0 %415 }
 0x1a3   : > { %1789 = vmatmul.msk.f32.vlgmr.msra.gmra.mxu0 %vm491_vm6, %v362_v60 }
 0x1a4   : > { %v401_v25 = vpop.permute.xlu1 %400 }
 0x1aa   : > { %v391_v54 = vpop.permute.xlu0 %390 }
 0x1ab   : > { %1790 = vmatmul.msk.f32.gmra.mxu0 %vm491_vm6, %v363_v63 }
 0x1ac   : > { %v386_v51 = vpop.permute.xlu1 %385 }
 0x1b3   : > { %1791 = vmatmul.msk.f32.gmra.mxu0 %vm491_vm6, %v364_v0 }
 0x1bb   : > { %1792 = vmatmul.msk.f32.gmra.mxu0 %vm491_vm6, %v365_v1 }
 0x1c3   : > { %1793 = vmatmul.msk.f32.gmra.mxu0 %vm491_vm6, %v366_v5 }
 0x1c6   : > { %v381_v62 = vpop.permute.xlu2 %380 }
 0x1cb   : > { %1794 = vmatmul.msk.f32.gmra.mxu0 %vm491_vm6, %v367_v8 }
 0x1d3   : > { %1795 = vmatmul.msk.f32.gmra.mxu0 %vm491_vm6, %v368_v11 }
 0x1db   : > { %1796 = vmatmul.msk.f32.gmra.mxu0 %vm491_vm6, %v369_v14 }
 0x220   : > { %v533_v17 = vpop.f32.mrf.mxu0 }
 0x221   : > { %v534_v3 = vadd.f32 %v533_v17, %v381_v62 }
 0x228   : > { %v536_v20 = vpop.f32.mrf.mxu0 }
 0x229   : > { %v537_v57 = vadd.f32 %v536_v20, %v386_v51  ;;  %v642_v51 = vld [vmem:[%s3262_s4 + $0x8] sm:$0xff] }
 0x230   : > { %v539_v21 = vpop.f32.mrf.mxu0 }
 0x231   : > { %v540_v58 = vadd.f32 %v539_v21, %v391_v54 }
 0x238   : > { %v542_v22 = vpop.f32.mrf.mxu0 }
 0x239   : > { %v543_v60 = vadd.f32 %v542_v22, %v396_v46 }
 0x240   : > { %v545_v24 = vpop.f32.mrf.mxu0 }
 0x241   : > { %v546_v26 = vadd.f32 %v545_v24, %v401_v25 }
 0x243   : > { %v1797_v30 = vmul.f32 -1.442695, %v546_v26 }
 0x245   : > { %2201 = vpow2.f32 %v1797_v30 }
 0x248   : > { %v548_v28 = vpop.f32.mrf.mxu0 }
 0x249   : > { %v549_v29 = vadd.f32 %v548_v28, %v406_v27 }
 0x24b   : > { %v1798_v31 = vmul.f32 -1.442695, %v549_v29  ;;  %v2202_v35 = vpop.eup %2201 }
 0x24c   : > { %v2601_v37 = vadd.f32 1.0, %v2202_v35 }
 0x24d   : > { %2203 = vpow2.f32 %v1798_v31 }
 0x24e   : > { %vm582_vm7 = vweird.f32 %v2601_v37 }
 0x250   : > { %v551_v32 = vpop.f32.mrf.mxu0 }
 0x251   : > { %v552_v33 = vadd.f32 %v551_v32, %v411_v23 }
 0x253   : > { %v1799_v34 = vmul.f32 -1.442695, %v552_v33  ;;  %v2204_v36 = vpop.eup %2203  ;;  %v586_v33 = vand.u32 2147483647, %v2601_v37 }
 0x254   : > { %v2603_v39 = vadd.f32 1.0, %v2204_v36 }
 0x255   : > { %2205 = vpow2.f32 %v1799_v34  ;;  %v588_v34 = vand.u32 2147483648, %v2601_v37 }
 0x256   : > { %2207 = vrcp.f32 %v2601_v37  ;;  %vm597_vm13 = vweird.f32 %v2603_v39  ;;  %v601_v23 = vand.u32 2147483647, %v2603_v39  ;;  %v603_v24 = vand.u32 2147483648, %v2603_v39 }
 0x257   : > { %2209 = vrcp.f32 %v2603_v39 }
 0x258   : > { %v554_v40 = vpop.f32.mrf.mxu0 }
 0x259   : > { %v555_v41 = vadd.f32 %v554_v40, %v416_v38  ;;  %v604_v40 = vor.u32 1.1754944e-38, %v603_v24 }
 0x25b   : > { %v2206_v42 = vpop.eup %2205  ;;  %v1800_v43 = vmul.f32 -1.442695, %v555_v41 }
 0x25c   : > { %v2607_v44 = vadd.f32 1.0, %v2206_v42  ;;  %v2610_v45 = vpop.eup %2207 }
 0x25d   : > { %2211 = vpow2.f32 %v1800_v43  ;;  %v2612_v47 = vpop.eup %2209  ;;  %v578_v55 = vmul.f32 %v2610_v45, %v2601_v37  ;;  %vm583_vm14 = vweird.f32 %v2610_v45  ;;  %v641_v37 = vld [vmem:[%s3262_s4] sm:$0xff] }
 0x25e   : > { %2213 = vrcp.f32 %v2607_v44  ;;  %v593_v53 = vmul.f32 %v2612_v47, %v2603_v39  ;;  %vm598_vm9 = vweird.f32 %v2612_v47  ;;  %vm612_vm10 = vweird.f32 %v2607_v44 }
 0x25f   : > { %v579_v61 = vsub.f32 1.0, %v578_v55  ;;  %v616_v8 = vand.u32 2147483647, %v2607_v44  ;;  %v618_v11 = vand.u32 2147483648, %v2607_v44  ;;  %vm2646_vm1 = vmor %vm597_vm13, %vm598_vm9 }
 0x260   : > { %v594_v59 = vsub.f32 1.0, %v593_v53  ;;  %vm584_vm9 = vmor %vm582_vm7, %vm583_vm14  ;;  %vm697_vm7 = vcmask 261120   ;;  %v675_v53 = vpop.permute.xlu0 %674 }
 0x261   : > { %v580_v4 = vmul.f32 %v2610_v45, %v579_v61  ;;  %v619_v32 = vor.u32 1.1754944e-38, %v618_v11 }
 0x262   : > { %v595_v2 = vmul.f32 %v2612_v47, %v594_v59 }
 0x263   : > { %v2212_v48 = vpop.eup %2211  ;;  %v581_v29 = vadd.f32 %v2610_v45, %v580_v4 }
 0x264   : > { %v2614_v49 = vpop.eup %2213  ;;  %v576_v50 = vadd.f32 1.0, %v2212_v48  ;;  %v596_v20 = vadd.f32 %v2612_v47, %v595_v2 }
 0x265   : > { %v608_v52 = vmul.f32 %v2614_v49, %v2607_v44  ;;  %vm613_vm8 = vweird.f32 %v2614_v49  ;;  %v585_v42 = vsel %vm584_vm9, %v2610_v45, %v581_v29  ;;  %v589_v44 = vor.u32 1.1754944e-38, %v588_v34  ;;  %v644_v45 = vld [vmem:[%s3262_s4 + $0x18] sm:$0xff] }
 0x266   : > { %2215 = vrcp.f32 %v576_v50  ;;  %v633_v7 = vand.u32 2147483648, %v576_v50  ;;  %v631_v17 = vand.u32 2147483647, %v576_v50  ;;  %vm2633_vm12 = vmor %vm612_vm10, %vm613_vm8  ;;  %vm627_vm15 = vweird.f32 %v576_v50 }
 0x267   : > { %v609_v56 = vsub.f32 1.0, %v608_v52  ;;  %2217 = vtanh.f32 %v537_v57  ;;  %vm617_vm8 = vcmp.eq.f32.partialorder %v616_v8, 8.507059e+37  ;;  %v600_v36 = vsel %vm2646_vm1, %v2612_v47, %v596_v20  ;;  %v643_v52 = vld [vmem:[%s3262_s4 + $0x10] sm:$0xff]  ;;  %v665_v57 = vpop.permute.xlu2 %664 }
 0x268   : > { %2219 = vtanh.f32 %v540_v58  ;;  %v634_v31 = vor.u32 1.1754944e-38, %v633_v7  ;;  %vm632_vm5 = vcmp.eq.f32.partialorder %v631_v17, 8.507059e+37  ;;  %vm602_vm10 = vcmp.eq.f32.partialorder %v601_v23, 8.507059e+37 }
 0x269   : > { %v610_v63 = vmul.f32 %v2614_v49, %v609_v56  ;;  %2221 = vtanh.f32 %v543_v60  ;;  %v605_v43 = vsel %vm602_vm10, %v604_v40, %v600_v36  ;;  %v670_v60 = vpop.permute.xlu1 %669 }
 0x26a   : > { %2223 = vtanh.f32 %v534_v3 }
 0x26b   : > { %v611_v6 = vadd.f32 %v2614_v49, %v610_v63  ;;  %v660_v63 = vpop.permute.xlu0 %659 }
 0x26c   : > { %v2216_v0 = vpop.eup %2215 }
 0x26d   : > { %v623_v1 = vmul.f32 %v2216_v0, %v576_v50  ;;  %vm628_vm11 = vweird.f32 %v2216_v0  ;;  %v2218_v21 = vpop.eup %2217  ;;  %v615_v27 = vsel %vm2633_vm12, %v2614_v49, %v611_v6  ;;  %vm865_vm12 = vcmask 1014784  }
 0x26e   : > { %v2220_v25 = vpop.eup %2219  ;;  %vm629_vm4 = vmor %vm627_vm15, %vm628_vm11  ;;  %v620_v39 = vsel %vm617_vm8, %v619_v32, %v615_v27  ;;  %vm587_vm11 = vcmp.eq.f32.partialorder %v586_v33, 8.507059e+37  ;;  %v638_v48 = vmul.f32 %v2218_v21, %v605_v43 }
 0x26f   : > { %v624_v5 = vsub.f32 1.0, %v623_v1  ;;  %v2222_v30 = vpop.eup %2221  ;;  %v639_v46 = vmul.f32 %v2220_v25, %v620_v39  ;;  %v590_v47 = vsel %vm587_vm11, %v589_v44, %v585_v42 }
 0x270   : > { %v2224_v49 = vpop.eup %2223 }
 0x271   : > { %v625_v14 = vmul.f32 %v2216_v0, %v624_v5  ;;  %v637_v50 = vmul.f32 %v2224_v49, %v590_v47 }
 0x273   : > { %v626_v26 = vadd.f32 %v2216_v0, %v625_v14  ;;  %v2682_v2 = vpop.permute.xlu0 %790 }
 0x275   : > { %v630_v35 = vsel %vm629_vm4, %v2216_v0, %v626_v26 }
 0x276   : > { %v635_v38 = vsel %vm632_vm5, %v634_v31, %v630_v35 }
 0x277   : > { %v640_v41 = vmul.f32 %v2222_v30, %v635_v38 }
 0x279   : > { %734 = vmatpush.msrb.mxu0 %v640_v41  ;;  %1920 = vmatpush.msra.mxu1 %v640_v41 }
 0x27b   : > { %735 = vmatpush.msrb.mxu0 %v639_v46  ;;  %1921 = vmatpush.msra.mxu1 %v639_v46 }
 0x27d   : > { %736 = vmatpush.msrb.mxu0 %v638_v48  ;;  %1922 = vmatpush.msra.mxu1 %v638_v48 }
 0x27f   : > { %737 = vmatpush.msrb.mxu0 %v637_v50  ;;  %1923 = vmatpush.msra.mxu1 %v637_v50 }
 0x280   : > { %1801 = vmatmul.msk.f32.vlgmr.msrb.gmra.mxu0 %vm697_vm7, %v641_v37  ;;  %1804 = vmatmul.msk.f32.vlgmr.msra.gmra.mxu1 %vm697_vm7, %v644_v45 }
 0x288   : > { %1802 = vmatmul.msk.f32.gmra.mxu0 %vm697_vm7, %v642_v51 }
 0x290   : > { %1803 = vmatmul.msk.f32.gmra.mxu0 %vm697_vm7, %v643_v52 }
 0x2fd   : > { %v739_v54 = vpop.f32.mrf.mxu0  ;;  %v748_v55 = vpop.f32.mrf.mxu1 }
 0x2fe   : > { %v749_v56 = vadd.f32 %v748_v55, %v675_v53  ;;  %v740_v0 = vadd.f32 %v739_v54, %v660_v63 }
 0x300   : > { %773 = vrot.lane.b32.xlu1 %v749_v56, %s2339_s17 }
 0x305   : > { %v742_v58 = vpop.f32.mrf.mxu0 }
 0x306   : > { %v743_v59 = vadd.f32 %v742_v58, %v665_v57 }
 0x308   : > { %769 = vrot.lane.b32.xlu1 %v743_v59, %s2339_s17  ;;  %v1824_v59 = vld [vmem:[%s3261_s3 + $0x78] sm:$0xff] }
 0x30d   : > { %v745_v61 = vpop.f32.mrf.mxu0 }
 0x30e   : > { %v746_v62 = vadd.f32 %v745_v61, %v670_v60 }
 0x310   : > { %771 = vrot.lane.b32.xlu2 %v746_v62, %s2339_s17 }
 0x318   : > { %767 = vrot.lane.b32.xlu2 %v740_v0, %s2339_s17 }
 0x36a   : > { %v772_v1 = vpop.permute.xlu2 %771 }
 0x36b   : > { %v783_v3 = vadd.f32 %v772_v1, %v2478_v15  ;;  %v784_v4 = vadd.f32 %v772_v1, %v2480_v16 }
 0x36d   : > { %v797_v5 = vmul.f32 %v2682_v2, %v783_v3  ;;  %v798_v6 = vmul.f32 %v2682_v2, %v784_v4 }
 0x36f   : > { %805 = vst.msk [vmem:[#allocation2 + $0x20] sm:$0xff] %vm294_vm2, %v797_v5 }
 0x370   : > { %806 = vst.msk [vmem:[#allocation2 + $0x28] sm:$0xff] %vm264_vm0, %v798_v6  ;;  %v1821_v6 = vld [vmem:[%s3261_s3 + $0x60] sm:$0xff] }
 0x372   : > { %v774_v7 = vpop.permute.xlu1 %773  ;;  %v768_v8 = vpop.permute.xlu2 %767 }
 0x373   : > { %v785_v11 = vadd.f32 %v774_v7, %v2457_v9  ;;  %v786_v14 = vadd.f32 %v774_v7, %v2460_v10  ;;  %v779_v17 = vadd.f32 %v768_v8, %v2486_v18  ;;  %v780_v15 = vadd.f32 %v768_v8, %v2488_v19 }
 0x375   : > { %v799_v16 = vmul.f32 %v2682_v2, %v785_v11  ;;  %v800_v20 = vmul.f32 %v2682_v2, %v786_v14  ;;  %v793_v21 = vmul.f32 %v2682_v2, %v779_v17  ;;  %v794_v22 = vmul.f32 %v2682_v2, %v780_v15  ;;  %v1822_v17 = vld [vmem:[%s3261_s3 + $0x68] sm:$0xff] }
 0x376   : > { %v2698_v23 = vld [vmem:[#allocation2 + $0x20] sm:$0xff] }
 0x377   : > { %807 = vst.msk [vmem:[#allocation2 + $0x30] sm:$0xff] %vm294_vm2, %v799_v16  ;;  %v2701_v24 = vld [vmem:[#allocation2 + $0x28] sm:$0xff] }
 0x378   : > { %808 = vst.msk [vmem:[#allocation2 + $0x38] sm:$0xff] %vm264_vm0, %v800_v20  ;;  %v2095_v9 = vpack.i.bf16 %v2701_v24, %v2698_v23  ;;  %v1818_v16 = vld [vmem:[%s3261_s3 + $0x48] sm:$0xff] }
 0x379   : > { %801 = vst.msk [vmem:[#allocation2] sm:$0xff] %vm294_vm2, %v793_v21  ;;  %v1819_v21 = vld [vmem:[%s3261_s3 + $0x50] sm:$0xff] }
 0x37a   : > { %802 = vst.msk [vmem:[#allocation2 + $0x8] sm:$0xff] %vm264_vm0, %v794_v22  ;;  %2096 = vrot.lane.b32.xlu1 %v2095_v9, %s2344_s26  ;;  %v770_v10 = vpop.permute.xlu1 %769  ;;  %v1823_v22 = vld [vmem:[%s3261_s3 + $0x70] sm:$0xff] }
 0x37b   : > { %v781_v18 = vadd.f32 %v770_v10, %v2467_v12  ;;  %v782_v19 = vadd.f32 %v770_v10, %v2470_v13  ;;  %v1848_v10 = vld [vmem:[%s3263_s5 + $0x58] sm:$0xff] }
 0x37d   : > { %v795_v25 = vmul.f32 %v2682_v2, %v781_v18  ;;  %v796_v26 = vmul.f32 %v2682_v2, %v782_v19  ;;  %v1820_v18 = vld [vmem:[%s3261_s3 + $0x58] sm:$0xff]  ;;  %v1845_v19 = vld [vmem:[%s3263_s5 + $0x40] sm:$0xff] }
 0x37e   : > { %v2713_v27 = vld [vmem:[#allocation2 + $0x30] sm:$0xff] }
 0x37f   : > { %803 = vst.msk [vmem:[#allocation2 + $0x10] sm:$0xff] %vm294_vm2, %v795_v25  ;;  %v2716_v28 = vld [vmem:[#allocation2 + $0x38] sm:$0xff]  ;;  %v1817_v25 = vld [vmem:[%s3261_s3 + $0x40] sm:$0xff] }
 0x380   : > { %804 = vst.msk [vmem:[#allocation2 + $0x18] sm:$0xff] %vm264_vm0, %v796_v26  ;;  %v2080_v29 = vpack.i.bf16 %v2716_v28, %v2713_v27  ;;  %v2723_v12 = vld [vmem:[#allocation2] sm:$0xff]  ;;  %v1846_v26 = vld [vmem:[%s3263_s5 + $0x48] sm:$0xff] }
 0x381   : > { %v2725_v13 = vld [vmem:[#allocation2 + $0x8] sm:$0xff] }
 0x382   : > { %2081 = vrot.lane.b32.xlu0 %v2080_v29, %s2344_s26  ;;  %2101 = vrot.lane.b32.xlu1 %v2080_v29, %s2340_s18  ;;  %v2115_v33 = vpack.i.bf16 %v2725_v13, %v2723_v12 }
 0x386   : > { %v2727_v30 = vld [vmem:[#allocation2 + $0x10] sm:$0xff] }
 0x387   : > { %v2729_v31 = vld [vmem:[#allocation2 + $0x18] sm:$0xff] }
 0x388   : > { %v2090_v32 = vpack.i.bf16 %v2729_v31, %v2727_v30 }
 0x38a   : > { %2091 = vrot.lane.b32.xlu2 %v2090_v32, %s2344_s26  ;;  %2116 = vrot.lane.b32.xlu1 %v2115_v33, %s2340_s18 }
 0x38b   : > { %2086 = vrot.lane.b32.xlu0 %v2115_v33, %s2344_s26 }
 0x392   : > { %2106 = vrot.lane.b32.xlu2 %v2095_v9, %s2340_s18  ;;  %v1847_v9 = vld [vmem:[%s3263_s5 + $0x50] sm:$0xff] }
 0x393   : > { %2111 = vrot.lane.b32.xlu0 %v2090_v32, %s2340_s18 }
 0x3e4   : > { %v2092_v34 = vpop.permute.xlu2 %2091 }
 0x3e5   : > { %v2094_v35 = vunpack.i.h.bf16 %v2092_v34  ;;  %v2093_v36 = vunpack.i.l.bf16 %v2092_v34 }
 0x3e7   : > { %v867_v38 = vsel %vm865_vm12, %v2093_v36, %v2094_v35 }
 0x3e8   : > { %v2130_v39 = vpack.i.bf16 %v2094_v35, %v867_v38 }
 0x3ea   : > { %2131 = vrot.lane.b32.xlu1 %v2130_v39, %s2340_s18 }
 0x3ec   : > { %v2097_v40 = vpop.permute.xlu1 %2096  ;;  %v2107_v41 = vpop.permute.xlu2 %2106 }
 0x3ed   : > { %v2099_v42 = vunpack.i.h.bf16 %v2097_v40  ;;  %v2098_v43 = vunpack.i.l.bf16 %v2097_v40  ;;  %v2109_v44 = vunpack.i.h.bf16 %v2107_v41  ;;  %v2108_v46 = vunpack.i.l.bf16 %v2107_v41 }
 0x3ef   : > { %v868_v47 = vsel %vm865_vm12, %v2098_v43, %v2099_v42  ;;  %v2744_v48 = vsel %vm357_vm3, %v2108_v46, %v2109_v44 }
 0x3f0   : > { %v2135_v49 = vpack.i.bf16 %v2099_v42, %v868_v47  ;;  %v2145_v50 = vpack.i.bf16 %v2109_v44, %v2744_v48 }
 0x3f2   : > { %2136 = vrot.lane.b32.xlu0 %v2135_v49, %s2340_s18  ;;  %2146 = vrot.lane.b32.xlu1 %v2145_v50, %s2340_s18 }
 0x3f4   : > { %v2082_v37 = vpop.permute.xlu0 %2081  ;;  %v2102_v45 = vpop.permute.xlu1 %2101 }
 0x3f5   : > { %v2084_v51 = vunpack.i.h.bf16 %v2082_v37  ;;  %v2083_v52 = vunpack.i.l.bf16 %v2082_v37  ;;  %v2104_v53 = vunpack.i.h.bf16 %v2102_v45  ;;  %v2103_v54 = vunpack.i.l.bf16 %v2102_v45 }
 0x3f7   : > { %v869_v55 = vsel %vm865_vm12, %v2083_v52, %v2084_v51  ;;  %v2751_v56 = vsel %vm357_vm3, %v2103_v54, %v2104_v53 }
 0x3f8   : > { %v2120_v57 = vpack.i.bf16 %v2084_v51, %v869_v55  ;;  %v2140_v58 = vpack.i.bf16 %v2104_v53, %v2751_v56 }
 0x3fa   : > { %2121 = vrot.lane.b32.xlu2 %v2120_v57, %s2340_s18  ;;  %2141 = vrot.lane.b32.xlu0 %v2140_v58, %s2340_s18 }
 0x3fb   : > { %925 = vperm.xlu1 %2078, %v1824_v59  }
 0x3fc   : > { %v2117_v60 = vpop.permute.xlu1 %2116 }
 0x3fd   : > { %v2119_v61 = vunpack.i.h.bf16 %v2117_v60  ;;  %v2118_v62 = vunpack.i.l.bf16 %v2117_v60  ;;  %v2087_v63 = vpop.permute.xlu0 %2086 }
 0x3fe   : > { %v2089_v0 = vunpack.i.h.bf16 %v2087_v63  ;;  %v2088_v1 = vunpack.i.l.bf16 %v2087_v63 }
 0x3ff   : > { %v2760_v3 = vsel %vm357_vm3, %v2118_v62, %v2119_v61 }
 0x400   : > { %v2155_v4 = vpack.i.bf16 %v2119_v61, %v2760_v3  ;;  %v866_v5 = vsel %vm865_vm12, %v2088_v1, %v2089_v0  ;;  %v1809_v1 = vld [vmem:[%s3260_s2 + $0x40] sm:$0xff] }
 0x401   : > { %v2125_v7 = vpack.i.bf16 %v2089_v0, %v866_v5  ;;  %v1814_v5 = vld [vmem:[%s3260_s2 + $0x68] sm:$0xff] }
 0x402   : > { %2156 = vrot.lane.b32.xlu0 %v2155_v4, %s2340_s18  ;;  %v1810_v4 = vld [vmem:[%s3260_s2 + $0x48] sm:$0xff] }
 0x403   : > { %2126 = vrot.lane.b32.xlu2 %v2125_v7, %s2340_s18  ;;  %910 = vperm.xlu1 %2078, %v1821_v6   ;;  %v1815_v6 = vld [vmem:[%s3260_s2 + $0x70] sm:$0xff]  ;;  %v1816_v7 = vld [vmem:[%s3260_s2 + $0x78] sm:$0xff] }
 0x405   : > { %v2112_v8 = vpop.permute.xlu0 %2111 }
 0x406   : > { %v2114_v11 = vunpack.i.h.bf16 %v2112_v8  ;;  %v2113_v14 = vunpack.i.l.bf16 %v2112_v8 }
 0x408   : > { %v2773_v15 = vsel %vm357_vm3, %v2113_v14, %v2114_v11 }
 0x409   : > { %v2150_v20 = vpack.i.bf16 %v2114_v11, %v2773_v15 }
 0x40a   : > { %915 = vperm.xlu0 %2077, %v1822_v17  }
 0x40b   : > { %2151 = vrot.lane.b32.xlu2 %v2150_v20, %s2340_s18  ;;  %895 = vperm.xlu1 %2078, %v1818_v16   ;;  %s2294_s18 = scalar_lea.hbm %s3264_s6, 64 }
 0x412   : > { %900 = vperm.xlu0 %2077, %v1819_v21  }
 0x413   : > { %920 = vperm.xlu2 %2079, %v1823_v22   ;;  %1159 = vperm.xlu1 %2078, %v1847_v9  }
 0x41a   : > { %1164 = vperm.xlu0 %2077, %v1848_v10  }
 0x41b   : > { %905 = vperm.xlu2 %2079, %v1820_v18  }
 0x422   : > { %1149 = vperm.xlu0 %2077, %v1845_v19  }
 0x423   : > { %890 = vperm.xlu2 %2079, %v1817_v25  }
 0x42b   : > { %1154 = vperm.xlu2 %2079, %v1846_v26  }
 0x454   : > { %v2122_v29 = vpop.permute.xlu2 %2121 }
 0x455   : > { %v2124_v32 = vunpack.i.h.bf16 %v2122_v29  ;;  %v2123_v33 = vunpack.i.l.bf16 %v2122_v29 }
 0x457   : > { %v967_v34 = vsel %vm357_vm3, %v2123_v33, %v2124_v32 }
 0x458   : > { %1008 = vmatpush.msra.mxu2 %v967_v34 }
 0x45c   : > { %v2132_v35 = vpop.permute.xlu1 %2131 }
 0x45d   : > { %v2127_v36 = vpop.permute.xlu2 %2126  ;;  %v2134_v39 = vunpack.i.h.bf16 %v2132_v35  ;;  %v2133_v40 = vunpack.i.l.bf16 %v2132_v35 }
 0x45e   : > { %v2129_v43 = vunpack.i.h.bf16 %v2127_v36  ;;  %v2128_v44 = vunpack.i.l.bf16 %v2127_v36 }
 0x45f   : > { %v965_v47 = vsel %vm357_vm3, %v2133_v40, %v2134_v39 }
 0x460   : > { %v964_v50 = vsel %vm357_vm3, %v2128_v44, %v2129_v43 }
 0x464   : > { %v2137_v38 = vpop.permute.xlu0 %2136  ;;  %v2147_v49 = vpop.permute.xlu1 %2146 }
 0x465   : > { %v2139_v41 = vunpack.i.h.bf16 %v2137_v38  ;;  %v2138_v42 = vunpack.i.l.bf16 %v2137_v38  ;;  %v2152_v37 = vpop.permute.xlu2 %2151  ;;  %v2149_v51 = vunpack.i.h.bf16 %v2147_v49  ;;  %v2148_v52 = vunpack.i.l.bf16 %v2147_v49 }
 0x466   : > { %v2154_v55 = vunpack.i.h.bf16 %v2152_v37  ;;  %v2153_v57 = vunpack.i.l.bf16 %v2152_v37 }
 0x467   : > { %v966_v46 = vsel %vm357_vm3, %v2138_v42, %v2139_v41  ;;  %v962_v59 = vsel %vm357_vm3, %v2148_v52, %v2149_v51 }
 0x468   : > { %1009 = vmatpush.msra.mxu2 %v966_v46  ;;  %v961_v60 = vsel %vm357_vm3, %v2153_v57, %v2154_v55 }
 0x46a   : > { %1010 = vmatpush.msra.mxu2 %v965_v47 }
 0x46c   : > { %v2142_v45 = vpop.permute.xlu0 %2141  ;;  %1011 = vmatpush.msra.mxu2 %v964_v50 }
 0x46d   : > { %v2144_v53 = vunpack.i.h.bf16 %v2142_v45  ;;  %v2143_v54 = vunpack.i.l.bf16 %v2142_v45  ;;  %v921_v25 = vpop.permute.xlu2 %920 }
 0x46f   : > { %v963_v58 = vsel %vm357_vm3, %v2143_v54, %v2144_v53 }
 0x470   : > { %1012 = vmatpush.msra.mxu2 %v963_v58 }
 0x472   : > { %1013 = vmatpush.msra.mxu2 %v962_v59 }
 0x474   : > { %v2157_v61 = vpop.permute.xlu0 %2156  ;;  %1014 = vmatpush.msra.mxu2 %v961_v60 }
 0x475   : > { %v2159_v62 = vunpack.i.h.bf16 %v2157_v61  ;;  %v2158_v63 = vunpack.i.l.bf16 %v2157_v61  ;;  %v906_v47 = vpop.permute.xlu2 %905 }
 0x477   : > { %v960_v0 = vsel %vm357_vm3, %v2158_v63, %v2159_v62 }
 0x478   : > { %1015 = vmatpush.msra.mxu2 %v960_v0 }
 0x47a   : > { %1016 = vmatpush.msra.mxu2 %v2751_v56  ;;  %v1812_v56 = vld [vmem:[%s3260_s2 + $0x58] sm:$0xff] }
 0x47c   : > { %1017 = vmatpush.msra.mxu2 %v2744_v48  ;;  %v1811_v48 = vld [vmem:[%s3260_s2 + $0x50] sm:$0xff]  ;;  %v916_v22 = vpop.permute.xlu0 %915 }
 0x47d   : > { %v891_v63 = vpop.permute.xlu2 %890 }
 0x47e   : > { %1018 = vmatpush.msra.mxu2 %v2773_v15  ;;  %v926_v15 = vpop.permute.xlu1 %925 }
 0x480   : > { %1019 = vmatpush.msra.mxu2 %v2760_v3  ;;  %v1813_v3 = vld [vmem:[%s3260_s2 + $0x60] sm:$0xff] }
 0x481   : > { %1825 = vmatmul.msk.f32.vlgmr.msra.gmra.mxu2 %vm491_vm6, %v1809_v1 }
 0x484   : > { %v901_v54 = vpop.permute.xlu0 %900 }
 0x486   : > { %v911_v20 = vpop.permute.xlu1 %910 }
 0x489   : > { %1826 = vmatmul.msk.f32.gmra.mxu2 %vm491_vm6, %v1810_v4 }
 0x48e   : > { %v896_v52 = vpop.permute.xlu1 %895 }
 0x491   : > { %1827 = vmatmul.msk.f32.gmra.mxu2 %vm491_vm6, %v1811_v48 }
 0x499   : > { %1828 = vmatmul.msk.f32.gmra.mxu2 %vm491_vm6, %v1812_v56 }
 0x4a1   : > { %1829 = vmatmul.msk.f32.gmra.mxu2 %vm491_vm6, %v1813_v3 }
 0x4a9   : > { %1830 = vmatmul.msk.f32.gmra.mxu2 %vm491_vm6, %v1814_v5 }
 0x4b1   : > { %1831 = vmatmul.msk.f32.gmra.mxu2 %vm491_vm6, %v1815_v6 }
 0x4b9   : > { %1832 = vmatmul.msk.f32.gmra.mxu2 %vm491_vm6, %v1816_v7 }
 0x504   : > { %v1021_v8 = vpop.f32.mrf.mxu2 }
 0x505   : > { %v1022_v4 = vadd.f32 %v1021_v8, %v891_v63 }
 0x50c   : > { %v1024_v11 = vpop.f32.mrf.mxu2 }
 0x50d   : > { %v1025_v55 = vadd.f32 %v1024_v11, %v896_v52  ;;  %v1165_v52 = vpop.permute.xlu0 %1164 }
 0x514   : > { %v1027_v14 = vpop.f32.mrf.mxu2 }
 0x515   : > { %v1028_v57 = vadd.f32 %v1027_v14, %v901_v54 }
 0x51c   : > { %v1030_v17 = vpop.f32.mrf.mxu2 }
 0x51d   : > { %v1031_v59 = vadd.f32 %v1030_v17, %v906_v47 }
 0x524   : > { %v1033_v16 = vpop.f32.mrf.mxu2 }
 0x525   : > { %v1034_v21 = vadd.f32 %v1033_v16, %v911_v20 }
 0x527   : > { %v1833_v18 = vmul.f32 -1.442695, %v1034_v21 }
 0x529   : > { %2225 = vpow2.f32 %v1833_v18 }
 0x52c   : > { %v1036_v9 = vpop.f32.mrf.mxu2 }
 0x52d   : > { %v1037_v10 = vadd.f32 %v1036_v9, %v916_v22 }
 0x52f   : > { %v1834_v19 = vmul.f32 -1.442695, %v1037_v10  ;;  %v2226_v33 = vpop.eup %2225 }
 0x530   : > { %v2848_v35 = vadd.f32 1.0, %v2226_v33 }
 0x531   : > { %2227 = vpow2.f32 %v1834_v19 }
 0x532   : > { %vm1070_vm3 = vweird.f32 %v2848_v35 }
 0x534   : > { %v1039_v26 = vpop.f32.mrf.mxu2 }
 0x535   : > { %v1040_v29 = vadd.f32 %v1039_v26, %v921_v25 }
 0x537   : > { %v1835_v32 = vmul.f32 -1.442695, %v1040_v29  ;;  %v2228_v34 = vpop.eup %2227  ;;  %v1074_v29 = vand.u32 2147483647, %v2848_v35 }
 0x538   : > { %v2850_v36 = vadd.f32 1.0, %v2228_v34 }
 0x539   : > { %2229 = vpow2.f32 %v1835_v32  ;;  %v1076_v32 = vand.u32 2147483648, %v2848_v35 }
 0x53a   : > { %2231 = vrcp.f32 %v2848_v35  ;;  %vm1085_vm5 = vweird.f32 %v2850_v36  ;;  %v1089_v16 = vand.u32 2147483647, %v2850_v36  ;;  %v1091_v20 = vand.u32 2147483648, %v2850_v36 }
 0x53b   : > { %2233 = vrcp.f32 %v2850_v36 }
 0x53c   : > { %v1042_v38 = vpop.f32.mrf.mxu2 }
 0x53d   : > { %v1043_v39 = vadd.f32 %v1042_v38, %v926_v15 }
 0x53f   : > { %v2230_v40 = vpop.eup %2229  ;;  %v1836_v41 = vmul.f32 -1.442695, %v1043_v39  ;;  %v1092_v39 = vor.u32 1.1754944e-38, %v1091_v20 }
 0x540   : > { %v2854_v42 = vadd.f32 1.0, %v2230_v40  ;;  %v2857_v43 = vpop.eup %2231 }
 0x541   : > { %2235 = vpow2.f32 %v1836_v41  ;;  %v2859_v44 = vpop.eup %2233  ;;  %v1066_v51 = vmul.f32 %v2857_v43, %v2848_v35  ;;  %vm1071_vm8 = vweird.f32 %v2857_v43  ;;  %v1837_v35 = vld [vmem:[%s3262_s4 + $0x40] sm:$0xff] }
 0x542   : > { %2237 = vrcp.f32 %v2854_v42  ;;  %v1081_v45 = vmul.f32 %v2859_v44, %v2850_v36  ;;  %vm1086_vm14 = vweird.f32 %v2859_v44  ;;  %vm1100_vm15 = vweird.f32 %v2854_v42 }
 0x543   : > { %v1067_v60 = vsub.f32 1.0, %v1066_v51  ;;  %v1104_v6 = vand.u32 2147483647, %v2854_v42  ;;  %v1106_v7 = vand.u32 2147483648, %v2854_v42  ;;  %vm2893_vm10 = vmor %vm1085_vm5, %vm1086_vm14  ;;  %v1839_v51 = vld [vmem:[%s3262_s4 + $0x50] sm:$0xff] }
 0x544   : > { %v1082_v58 = vsub.f32 1.0, %v1081_v45  ;;  %vm1072_vm14 = vmor %vm1070_vm3, %vm1071_vm8  ;;  %v1838_v45 = vld [vmem:[%s3262_s4 + $0x48] sm:$0xff] }
 0x545   : > { %v1068_v48 = vmul.f32 %v2857_v43, %v1067_v60  ;;  %v1107_v26 = vor.u32 1.1754944e-38, %v1106_v7 }
 0x546   : > { %v1083_v1 = vmul.f32 %v2859_v44, %v1082_v58  ;;  %v1150_v58 = vpop.permute.xlu0 %1149 }
 0x547   : > { %v2236_v46 = vpop.eup %2235  ;;  %v1069_v18 = vadd.f32 %v2857_v43, %v1068_v48  ;;  %v646_v48 = vld [vmem:[%s3262_s4 + $0x28] sm:$0xff] }
 0x548   : > { %v2861_v49 = vpop.eup %2237  ;;  %v1064_v50 = vadd.f32 1.0, %v2236_v46  ;;  %v1084_v14 = vadd.f32 %v2859_v44, %v1083_v1  ;;  %v1077_v46 = vor.u32 1.1754944e-38, %v1076_v32  ;;  %v645_v1 = vld [vmem:[%s3262_s4 + $0x20] sm:$0xff] }
 0x549   : > { %v1096_v37 = vmul.f32 %v2861_v49, %v2854_v42  ;;  %vm1101_vm13 = vweird.f32 %v2861_v49  ;;  %v1073_v41 = vsel %vm1072_vm14, %v2857_v43, %v1069_v18  ;;  %v1840_v43 = vld [vmem:[%s3262_s4 + $0x58] sm:$0xff]  ;;  %1805 = vmatmul.msk.f32.gmra.mxu1 %vm697_vm7, %v645_v1 }
 0x54a   : > { %2239 = vrcp.f32 %v1064_v50  ;;  %v1121_v5 = vand.u32 2147483648, %v1064_v50  ;;  %v1119_v11 = vand.u32 2147483647, %v1064_v50  ;;  %vm2880_vm4 = vmor %vm1100_vm15, %vm1101_vm13  ;;  %vm1115_vm9 = vweird.f32 %v1064_v50 }
 0x54b   : > { %v1097_v53 = vsub.f32 1.0, %v1096_v37  ;;  %2241 = vtanh.f32 %v1025_v55  ;;  %vm1105_vm15 = vcmp.eq.f32.partialorder %v1104_v6, 8.507059e+37  ;;  %v1088_v34 = vsel %vm2893_vm10, %v2859_v44, %v1084_v14  ;;  %v1842_v6 = vld [vmem:[%s3262_s4 + $0x68] sm:$0xff] }
 0x54c   : > { %2243 = vtanh.f32 %v1028_v57  ;;  %v1122_v25 = vor.u32 1.1754944e-38, %v1121_v5  ;;  %vm1120_vm13 = vcmp.eq.f32.partialorder %v1119_v11, 8.507059e+37  ;;  %v1155_v57 = vpop.permute.xlu2 %1154  ;;  %v647_v11 = vld [vmem:[%s3262_s4 + $0x30] sm:$0xff] }
 0x54d   : > { %v1098_v61 = vmul.f32 %v2861_v49, %v1097_v53  ;;  %2245 = vtanh.f32 %v1031_v59 }
 0x54e   : > { %2247 = vtanh.f32 %v1022_v4  ;;  %v1841_v4 = vld [vmem:[%s3262_s4 + $0x60] sm:$0xff] }
 0x54f   : > { %v1099_v3 = vadd.f32 %v2861_v49, %v1098_v61 }
 0x550   : > { %v2240_v62 = vpop.eup %2239 }
 0x551   : > { %v1111_v0 = vmul.f32 %v2240_v62, %v1064_v50  ;;  %vm1116_vm1 = vweird.f32 %v2240_v62  ;;  %v2242_v17 = vpop.eup %2241  ;;  %v1103_v9 = vsel %vm2880_vm4, %v2861_v49, %v1099_v3  ;;  %vm1075_vm4 = vcmp.eq.f32.partialorder %v1074_v29, 8.507059e+37  ;;  %1806 = vmatmul.msk.f32.gmra.mxu1 %vm697_vm7, %v646_v48 }
 0x552   : > { %v2244_v21 = vpop.eup %2243  ;;  %vm1117_vm11 = vmor %vm1115_vm9, %vm1116_vm1  ;;  %v1108_v38 = vsel %vm1105_vm15, %v1107_v26, %v1103_v9  ;;  %vm1090_vm1 = vcmp.eq.f32.partialorder %v1089_v16, 8.507059e+37  ;;  %v1078_v44 = vsel %vm1075_vm4, %v1077_v46, %v1073_v41  ;;  %v1874_v41 = vld [vmem:[%s3261_s3 + $0xa8] sm:$0xff]  ;;  %v1871_v46 = vld [vmem:[%s3261_s3 + $0x90] sm:$0xff] }
 0x553   : > { %v1112_v56 = vsub.f32 1.0, %v1111_v0  ;;  %v2246_v19 = vpop.eup %2245  ;;  %v1093_v42 = vsel %vm1090_vm1, %v1092_v39, %v1088_v34  ;;  %v1127_v47 = vmul.f32 %v2244_v21, %v1108_v38 }
 0x554   : > { %v1126_v49 = vmul.f32 %v2242_v17, %v1093_v42  ;;  %v2248_v50 = vpop.eup %2247  ;;  %v1876_v42 = vld [vmem:[%s3261_s3 + $0xb8] sm:$0xff] }
 0x555   : > { %v1113_v8 = vmul.f32 %v2240_v62, %v1112_v56  ;;  %v1125_v37 = vmul.f32 %v2248_v50, %v1078_v44  ;;  %v1873_v44 = vld [vmem:[%s3261_s3 + $0xa0] sm:$0xff]  ;;  %v1872_v50 = vld [vmem:[%s3261_s3 + $0x98] sm:$0xff] }
 0x557   : > { %v1114_v22 = vadd.f32 %v2240_v62, %v1113_v8 }
 0x559   : > { %v1118_v33 = vsel %vm1117_vm11, %v2240_v62, %v1114_v22  ;;  %v1160_v62 = vpop.permute.xlu1 %1159  ;;  %1807 = vmatmul.msk.f32.gmra.mxu1 %vm697_vm7, %v647_v11 }
 0x55a   : > { %v1123_v36 = vsel %vm1120_vm13, %v1122_v25, %v1118_v33  ;;  %v1843_v25 = vld [vmem:[%s3262_s4 + $0x70] sm:$0xff] }
 0x55b   : > { %v1128_v40 = vmul.f32 %v2246_v19, %v1123_v36  ;;  %v648_v19 = vld [vmem:[%s3262_s4 + $0x38] sm:$0xff] }
 0x55d   : > { %1223 = vmatpush.msrb.mxu2 %v1128_v40  ;;  %1924 = vmatpush.msra.mxu3 %v1128_v40  ;;  %v1844_v40 = vld [vmem:[%s3262_s4 + $0x78] sm:$0xff] }
 0x55f   : > { %1224 = vmatpush.msrb.mxu2 %v1127_v47  ;;  %1925 = vmatpush.msra.mxu3 %v1127_v47  ;;  %v1875_v47 = vld [vmem:[%s3261_s3 + $0xb0] sm:$0xff] }
 0x561   : > { %1225 = vmatpush.msrb.mxu2 %v1126_v49  ;;  %1926 = vmatpush.msra.mxu3 %v1126_v49  ;;  %v653_v49 = vld [vmem:[%s3263_s5 + $0x20] sm:$0xff] }
 0x562   : > { %1808 = vmatmul.msk.f32.gmra.mxu1 %vm697_vm7, %v648_v19 }
 0x563   : > { %1226 = vmatpush.msrb.mxu2 %v1125_v37  ;;  %1927 = vmatpush.msra.mxu3 %v1125_v37  ;;  %v1870_v37 = vld [vmem:[%s3261_s3 + $0x88] sm:$0xff] }
 0x564   : > { %1853 = vmatmul.msk.f32.vlgmr.msrb.gmra.mxu2 %vm697_vm7, %v1837_v35  ;;  %1856 = vmatmul.msk.f32.vlgmr.msra.gmra.mxu3 %vm697_vm7, %v1840_v43  ;;  %v656_v35 = vld [vmem:[%s3263_s5 + $0x38] sm:$0xff]  ;;  %v1869_v43 = vld [vmem:[%s3261_s3 + $0x80] sm:$0xff] }
 0x56c   : > { %1854 = vmatmul.msk.f32.gmra.mxu2 %vm697_vm7, %v1838_v45  ;;  %1857 = vmatmul.msk.f32.gmra.mxu3 %vm697_vm7, %v1841_v4  ;;  %v654_v45 = vld [vmem:[%s3263_s5 + $0x28] sm:$0xff] }
 0x574   : > { %1855 = vmatmul.msk.f32.gmra.mxu2 %vm697_vm7, %v1839_v51  ;;  %1858 = vmatmul.msk.f32.gmra.mxu3 %vm697_vm7, %v1842_v6  ;;  %v1851_v51 = vld [vmem:[%s3263_s5 + $0x70] sm:$0xff] }
 0x57c   : > { %1859 = vmatmul.msk.f32.gmra.mxu3 %vm697_vm7, %v1843_v25 }
 0x584   : > { %1860 = vmatmul.msk.f32.gmra.mxu3 %vm697_vm7, %v1844_v40 }
 0x5e7   : > { %v1228_v53 = vpop.f32.mrf.mxu2  ;;  %v1237_v54 = vpop.f32.mrf.mxu3 }
 0x5e8   : > { %v1238_v55 = vadd.f32 %v1237_v54, %v1165_v52  ;;  %v1229_v60 = vadd.f32 %v1228_v53, %v1150_v58  ;;  %v655_v52 = vld [vmem:[%s3263_s5 + $0x30] sm:$0xff]  ;;  %v1849_v53 = vld [vmem:[%s3263_s5 + $0x60] sm:$0xff]  ;;  %v1902_v54 = vld [vmem:[%s3263_s5 + $0xa8] sm:$0xff] }
 0x5e9   : > { %v1901_v58 = vld [vmem:[%s3263_s5 + $0xa0] sm:$0xff] }
 0x5ea   : > { %1262 = vrot.lane.b32.xlu1 %v1238_v55, %s2339_s17  ;;  %v1850_v55 = vld [vmem:[%s3263_s5 + $0x68] sm:$0xff] }
 0x5ef   : > { %v1231_v59 = vpop.f32.mrf.mxu2 }
 0x5f0   : > { %v1232_v61 = vadd.f32 %v1231_v59, %v1155_v57  ;;  %v1852_v57 = vld [vmem:[%s3263_s5 + $0x78] sm:$0xff]  ;;  %v1903_v59 = vld [vmem:[%s3263_s5 + $0xb0] sm:$0xff] }
 0x5f2   : > { %1258 = vrot.lane.b32.xlu0 %v1232_v61, %s2339_s17  ;;  %1256 = vrot.lane.b32.xlu1 %v1229_v60, %s2339_s17  ;;  %v1904_v60 = vld [vmem:[%s3263_s5 + $0xb8] sm:$0xff] }
 0x5f7   : > { %v1234_v63 = vpop.f32.mrf.mxu2 }
 0x5f8   : > { %v1235_v0 = vadd.f32 %v1234_v63, %v1160_v62 }
 0x5fa   : > { %1260 = vrot.lane.b32.xlu2 %v1235_v0, %s2339_s17  ;;  %s253_s17 = sand.u32 1, %s2328_s22  }
 0x5fb   : > { %s1786_s14 = sshll.u32 %s253_s17, 5 }
 0x5fc   : > { %s3216_s15 = scalar_lea.vmem [#allocation3], %s1786_s14 }
 0x5fd   : > { %s1708_s28 = sshll.u32 %s3216_s15, 4  ;;  %s1709_s28 = int_to_ptr.vmem [resolvable:$true] %s1708_s28 }
 0x654   : > { %v1261_v56 = vpop.permute.xlu2 %1260 }
 0x655   : > { %v1272_v3 = vadd.f32 %v1261_v56, %v2698_v23  ;;  %v1273_v5 = vadd.f32 %v1261_v56, %v2701_v24 }
 0x657   : > { %v1280_v7 = vmul.f32 %v1272_v3, %v2682_v2  ;;  %v1281_v8 = vmul.f32 %v1273_v5, %v2682_v2 }
 0x659   : > { %1288 = vst.msk [vmem:[#allocation2 + $0x20] sm:$0xff] %vm294_vm2, %v1280_v7 }
 0x65a   : > { %1289 = vst.msk [vmem:[#allocation2 + $0x28] sm:$0xff] %vm264_vm0, %v1281_v8 }
 0x65c   : > { %v1263_v23 = vpop.permute.xlu1 %1262 }
 0x65d   : > { %v1274_v24 = vadd.f32 %v1263_v23, %v2713_v27  ;;  %v1275_v14 = vadd.f32 %v1263_v23, %v2716_v28 }
 0x65f   : > { %v1282_v17 = vmul.f32 %v1274_v24, %v2682_v2  ;;  %v1283_v15 = vmul.f32 %v1275_v14, %v2682_v2 }
 0x660   : > { %v2959_v16 = vld [vmem:[#allocation2 + $0x20] sm:$0xff] }
 0x661   : > { %1290 = vst.msk [vmem:[#allocation2 + $0x30] sm:$0xff] %vm294_vm2, %v1282_v17  ;;  %v1302_v20 = vld [vmem:[#allocation2 + $0x28] sm:$0xff] }
 0x662   : > { %1291 = vst.msk [vmem:[#allocation2 + $0x38] sm:$0xff] %vm264_vm0, %v1283_v15  ;;  %v2175_v21 = vpack.i.bf16 %v1302_v20, %v2959_v16 }
 0x664   : > { %2176 = vrot.lane.b32.xlu0 %v2175_v21, %s2345_s19  ;;  %v1259_v22 = vpop.permute.xlu0 %1258  ;;  %v1257_v27 = vpop.permute.xlu1 %1256 }
 0x665   : > { %v1270_v28 = vadd.f32 %v1259_v22, %v2727_v30  ;;  %v1271_v9 = vadd.f32 %v1259_v22, %v2729_v31  ;;  %v1268_v10 = vadd.f32 %v1257_v27, %v2723_v12  ;;  %v1269_v18 = vadd.f32 %v1257_v27, %v2725_v13 }
 0x667   : > { %v1278_v26 = vmul.f32 %v1270_v28, %v2682_v2  ;;  %v1279_v29 = vmul.f32 %v1271_v9, %v2682_v2  ;;  %v1276_v30 = vmul.f32 %v1268_v10, %v2682_v2  ;;  %v1277_v12 = vmul.f32 %v1269_v18, %v2682_v2 }
 0x668   : > { %v2980_v31 = vld [vmem:[#allocation2 + $0x30] sm:$0xff] }
 0x669   : > { %1286 = vst.msk [vmem:[#allocation2 + $0x10] sm:$0xff] %vm294_vm2, %v1278_v26  ;;  %v1303_v13 = vld [vmem:[#allocation2 + $0x38] sm:$0xff] }
 0x66a   : > { %1287 = vst.msk [vmem:[#allocation2 + $0x18] sm:$0xff] %vm264_vm0, %v1279_v29  ;;  %v2160_v32 = vpack.i.bf16 %v1303_v13, %v2980_v31  ;;  %v1862_v13 = vld [vmem:[%s3260_s2 + $0x88] sm:$0xff] }
 0x66b   : > { %1284 = vst.msk [vmem:[#allocation2] sm:$0xff] %vm294_vm2, %v1276_v30 }
 0x66c   : > { %1285 = vst.msk [vmem:[#allocation2 + $0x8] sm:$0xff] %vm264_vm0, %v1277_v12  ;;  %2161 = vrot.lane.b32.xlu2 %v2160_v32, %s2345_s19  ;;  %2181 = vrot.lane.b32.xlu0 %v2160_v32, %s2344_s26  ;;  %vm1352_vm0 = vcmask 982016   ;;  %v1861_v12 = vld [vmem:[%s3260_s2 + $0x80] sm:$0xff] }
 0x66d   : > { %v1865_v32 = vld [vmem:[%s3260_s2 + $0xa0] sm:$0xff] }
 0x670   : > { %v2990_v2 = vld [vmem:[#allocation2 + $0x10] sm:$0xff] }
 0x671   : > { %v1301_v33 = vld [vmem:[#allocation2 + $0x18] sm:$0xff] }
 0x672   : > { %v2170_v34 = vpack.i.bf16 %v1301_v33, %v2990_v2  ;;  %v2993_v36 = vld [vmem:[#allocation2] sm:$0xff]  ;;  %v1867_v33 = vld [vmem:[%s3260_s2 + $0xb0] sm:$0xff] }
 0x673   : > { %v1300_v38 = vld [vmem:[#allocation2 + $0x8] sm:$0xff] }
 0x674   : > { %2171 = vrot.lane.b32.xlu1 %v2170_v34, %s2345_s19  ;;  %v2195_v39 = vpack.i.bf16 %v1300_v38, %v2993_v36 }
 0x676   : > { %2196 = vrot.lane.b32.xlu0 %v2195_v39, %s2344_s26  ;;  %2166 = vrot.lane.b32.xlu2 %v2195_v39, %s2345_s19 }
 0x67c   : > { %2186 = vrot.lane.b32.xlu1 %v2175_v21, %s2344_s26 }
 0x67e   : > { %1406 = vperm.xlu0 %2077, %v1874_v41   ;;  %2191 = vrot.lane.b32.xlu2 %v2170_v34, %s2344_s26  ;;  %v1868_v34 = vld [vmem:[%s3260_s2 + $0xb8] sm:$0xff] }
 0x684   : > { %1416 = vperm.xlu1 %2078, %v1876_v42  }
 0x686   : > { %1391 = vperm.xlu0 %2077, %v1871_v46   ;;  %1411 = vperm.xlu2 %2079, %v1875_v47  }
 0x68c   : > { %1401 = vperm.xlu1 %2078, %v1873_v44  }
 0x68e   : > { %679 = vperm.xlu0 %2077, %v653_v49   ;;  %1396 = vperm.xlu2 %2079, %v1872_v50  }
 0x694   : > { %1386 = vperm.xlu1 %2078, %v1870_v37  }
 0x696   : > { %694 = vperm.xlu0 %2077, %v656_v35   ;;  %1381 = vperm.xlu2 %2079, %v1869_v43  }
 0x69c   : > { %684 = vperm.xlu1 %2078, %v654_v45  }
 0x69e   : > { %1179 = vperm.xlu0 %2077, %v1851_v51   ;;  %689 = vperm.xlu2 %2079, %v655_v52  }
 0x6a4   : > { %1169 = vperm.xlu1 %2078, %v1849_v53  }
 0x6a6   : > { %1609 = vperm.xlu0 %2077, %v1902_v54   ;;  %1174 = vperm.xlu2 %2079, %v1850_v55  }
 0x6ac   : > { %1184 = vperm.xlu1 %2078, %v1852_v57  }
 0x6ae   : > { %1604 = vperm.xlu2 %2079, %v1901_v58  }
 0x6b4   : > { %1614 = vperm.xlu1 %2078, %v1903_v59  }
 0x6b6   : > { %1619 = vperm.xlu2 %2079, %v1904_v60  }
 0x6c6   : > { %v2162_v61 = vpop.permute.xlu2 %2161 }
 0x6c7   : > { %v2164_v62 = vunpack.i.h.bf16 %v2162_v61  ;;  %v2163_v63 = vunpack.i.l.bf16 %v2162_v61 }
 0x6c9   : > { %v1356_v0 = vsel %vm1352_vm0, %v2163_v63, %v2164_v62 }
 0x6ca   : > { %1447 = vmatpush.msrb.mxu1 %v1356_v0 }
 0x6d0   : > { %v2167_v3 = vpop.permute.xlu2 %2166 }
 0x6d1   : > { %v2169_v7 = vunpack.i.h.bf16 %v2167_v3  ;;  %v2168_v8 = vunpack.i.l.bf16 %v2167_v3 }
 0x6d3   : > { %v1353_v15 = vsel %vm1352_vm0, %v2168_v8, %v2169_v7 }
 0x6d6   : > { %v2177_v1 = vpop.permute.xlu0 %2176 }
 0x6d7   : > { %v2179_v4 = vunpack.i.h.bf16 %v2177_v1  ;;  %v2178_v48 = vunpack.i.l.bf16 %v2177_v1 }
 0x6d8   : > { %v2192_v20 = vpop.permute.xlu2 %2191 }
 0x6d9   : > { %v1355_v56 = vsel %vm1352_vm0, %v2178_v48, %v2179_v4  ;;  %v2194_v28 = vunpack.i.h.bf16 %v2192_v20  ;;  %v2193_v9 = vunpack.i.l.bf16 %v2192_v20 }
 0x6da   : > { %1448 = vmatpush.msrb.mxu1 %v1355_v56 }
 0x6db   : > { %v1329_v29 = vsel %vm865_vm12, %v2193_v9, %v2194_v28 }
 0x6de   : > { %v2182_v5 = vpop.permute.xlu0 %2181 }
 0x6df   : > { %v2184_v24 = vunpack.i.h.bf16 %v2182_v5  ;;  %v2183_v14 = vunpack.i.l.bf16 %v2182_v5 }
 0x6e0   : > { %v1412_v53 = vpop.permute.xlu2 %1411 }
 0x6e1   : > { %v1331_v21 = vsel %vm865_vm12, %v2183_v14, %v2184_v24 }
 0x6e6   : > { %v2172_v6 = vpop.permute.xlu1 %2171 }
 0x6e7   : > { %v2174_v11 = vunpack.i.h.bf16 %v2172_v6  ;;  %v2173_v23 = vunpack.i.l.bf16 %v2172_v6 }
 0x6e8   : > { %v2197_v22 = vpop.permute.xlu0 %2196  ;;  %v1397_v5 = vpop.permute.xlu2 %1396 }
 0x6e9   : > { %v1354_v17 = vsel %vm1352_vm0, %v2173_v23, %v2174_v11  ;;  %v2199_v19 = vunpack.i.h.bf16 %v2197_v22  ;;  %v2198_v25 = vunpack.i.l.bf16 %v2197_v22 }
 0x6ea   : > { %1449 = vmatpush.msrb.mxu1 %v1354_v17 }
 0x6eb   : > { %v1328_v30 = vsel %vm865_vm12, %v2198_v25, %v2199_v19 }
 0x6ec   : > { %1450 = vmatpush.msrb.mxu1 %v1353_v15 }
 0x6ee   : > { %v2187_v27 = vpop.permute.xlu1 %2186  ;;  %1451 = vmatpush.msrb.mxu1 %v1331_v21 }
 0x6ef   : > { %v2189_v10 = vunpack.i.h.bf16 %v2187_v27  ;;  %v2188_v18 = vunpack.i.l.bf16 %v2187_v27 }
 0x6f0   : > { %v1407_v35 = vpop.permute.xlu0 %1406 }
 0x6f1   : > { %v1330_v26 = vsel %vm865_vm12, %v2188_v18, %v2189_v10  ;;  %v1382_v10 = vpop.permute.xlu2 %1381 }
 0x6f2   : > { %1452 = vmatpush.msrb.mxu1 %v1330_v26 }
 0x6f4   : > { %1453 = vmatpush.msrb.mxu1 %v1329_v29 }
 0x6f6   : > { %1454 = vmatpush.msrb.mxu1 %v1328_v30  ;;  %v1417_v44 = vpop.permute.xlu1 %1416 }
 0x6f8   : > { %1455 = vmatpush.msrb.mxu1 %v2980_v31  ;;  %v1864_v31 = vld [vmem:[%s3260_s2 + $0x98] sm:$0xff]  ;;  %v1392_v17 = vpop.permute.xlu0 %1391 }
 0x6fa   : > { %1456 = vmatpush.msrb.mxu1 %v2959_v16  ;;  %v1863_v16 = vld [vmem:[%s3260_s2 + $0x90] sm:$0xff] }
 0x6fc   : > { %1457 = vmatpush.msrb.mxu1 %v2990_v2  ;;  %v1866_v2 = vld [vmem:[%s3260_s2 + $0xa8] sm:$0xff] }
 0x6fe   : > { %1458 = vmatpush.msrb.mxu1 %v2993_v36  ;;  %v3109_v36 = vpop.f32.mrf.mxu1  ;;  %v1402_v50 = vpop.permute.xlu1 %1401 }
 0x6ff   : > { %1877 = vmatmul.msk.f32.vlgmr.msrb.gmra.mxu1 %vm491_vm6, %v1861_v12 }
 0x706   : > { %v3111_v38 = vpop.f32.mrf.mxu1  ;;  %v1387_v24 = vpop.permute.xlu1 %1386 }
 0x707   : > { %1878 = vmatmul.msk.f32.gmra.mxu1 %vm491_vm6, %v1862_v13 }
 0x70e   : > { %v3113_v39 = vpop.f32.mrf.mxu1 }
 0x70f   : > { %1879 = vmatmul.msk.f32.gmra.mxu1 %vm491_vm6, %v1863_v16 }
 0x716   : > { %v3115_v40 = vpop.f32.mrf.mxu1 }
 0x717   : > { %1880 = vmatmul.msk.f32.gmra.mxu1 %vm491_vm6, %v1864_v31 }
 0x71f   : > { %1881 = vmatmul.msk.f32.gmra.mxu1 %vm491_vm6, %v1865_v32 }
 0x727   : > { %1882 = vmatmul.msk.f32.gmra.mxu1 %vm491_vm6, %v1866_v2 }
 0x72f   : > { %1883 = vmatmul.msk.f32.gmra.mxu1 %vm491_vm6, %v1867_v33 }
 0x737   : > { %1884 = vmatmul.msk.f32.gmra.mxu1 %vm491_vm6, %v1868_v34 }
 0x77c   : > { %v1460_v41 = vpop.f32.mrf.mxu1 }
 0x77d   : > { %v1461_v25 = vadd.f32 %v1460_v41, %v1382_v10 }
 0x784   : > { %v1463_v42 = vpop.f32.mrf.mxu1 }
 0x785   : > { %v1464_v15 = vadd.f32 %v1463_v42, %v1387_v24 }
 0x78c   : > { %v1466_v46 = vpop.f32.mrf.mxu1 }
 0x78d   : > { %v1467_v20 = vadd.f32 %v1466_v46, %v1392_v17 }
 0x794   : > { %v1469_v47 = vpop.f32.mrf.mxu1 }
 0x795   : > { %v1470_v22 = vadd.f32 %v1469_v47, %v1397_v5  ;;  %v1892_v5 = vld [vmem:[%s3262_s4 + $0x98] sm:$0xff] }
 0x79c   : > { %v1472_v49 = vpop.f32.mrf.mxu1 }
 0x79d   : > { %v1473_v37 = vadd.f32 %v1472_v49, %v1402_v50 }
 0x79f   : > { %v1885_v51 = vmul.f32 -1.442695, %v1473_v37 }
 0x7a1   : > { %2249 = vpow2.f32 %v1885_v51 }
 0x7a4   : > { %v1475_v43 = vpop.f32.mrf.mxu1 }
 0x7a5   : > { %v1476_v45 = vadd.f32 %v1475_v43, %v1407_v35 }
 0x7a7   : > { %v1886_v52 = vmul.f32 -1.442695, %v1476_v45  ;;  %v2250_v58 = vpop.eup %2249 }
 0x7a8   : > { %v3117_v60 = vadd.f32 1.0, %v2250_v58 }
 0x7a9   : > { %2251 = vpow2.f32 %v1886_v52 }
 0x7aa   : > { %vm1509_vm2 = vweird.f32 %v3117_v60  ;;  %v1513_v45 = vand.u32 2147483647, %v3117_v60  ;;  %v1515_v51 = vand.u32 2147483648, %v3117_v60 }
 0x7ac   : > { %v1478_v54 = vpop.f32.mrf.mxu1 }
 0x7ad   : > { %v1479_v55 = vadd.f32 %v1478_v54, %v1412_v53 }
 0x7af   : > { %v1887_v57 = vmul.f32 -1.442695, %v1479_v55  ;;  %v2252_v59 = vpop.eup %2251 }
 0x7b0   : > { %v3119_v61 = vadd.f32 1.0, %v2252_v59 }
 0x7b1   : > { %2253 = vpow2.f32 %v1887_v57 }
 0x7b2   : > { %2255 = vrcp.f32 %v3117_v60  ;;  %vm1524_vm9 = vweird.f32 %v3119_v61  ;;  %v1528_v41 = vand.u32 2147483647, %v3119_v61  ;;  %v1530_v42 = vand.u32 2147483648, %v3119_v61 }
 0x7b3   : > { %2257 = vrcp.f32 %v3119_v61 }
 0x7b4   : > { %v1481_v62 = vpop.f32.mrf.mxu1  ;;  %v1531_v57 = vor.u32 1.1754944e-38, %v1530_v42  ;;  %vm1529_vm0 = vcmp.eq.f32.partialorder %v1528_v41, 8.507059e+37 }
 0x7b5   : > { %v1482_v63 = vadd.f32 %v1481_v62, %v1417_v44  ;;  %v1516_v62 = vor.u32 1.1754944e-38, %v1515_v51 }
 0x7b7   : > { %v2254_v0 = vpop.eup %2253  ;;  %v1888_v1 = vmul.f32 -1.442695, %v1482_v63 }
 0x7b8   : > { %v3123_v4 = vadd.f32 1.0, %v2254_v0  ;;  %v3126_v48 = vpop.eup %2255 }
 0x7b9   : > { %2259 = vpow2.f32 %v1888_v1  ;;  %v3128_v56 = vpop.eup %2257  ;;  %v1505_v23 = vmul.f32 %v3126_v48, %v3117_v60  ;;  %vm1510_vm10 = vweird.f32 %v3126_v48  ;;  %v1889_v60 = vld [vmem:[%s3262_s4 + $0x80] sm:$0xff] }
 0x7ba   : > { %2261 = vrcp.f32 %v3123_v4  ;;  %v1520_v11 = vmul.f32 %v3128_v56, %v3119_v61  ;;  %vm1525_vm12 = vweird.f32 %v3128_v56  ;;  %vm1539_vm3 = vweird.f32 %v3123_v4  ;;  %vm1511_vm4 = vmor %vm1509_vm2, %vm1510_vm10 }
 0x7bb   : > { %v1506_v27 = vsub.f32 1.0, %v1505_v23  ;;  %v1543_v13 = vand.u32 2147483647, %v3123_v4  ;;  %v1545_v16 = vand.u32 2147483648, %v3123_v4  ;;  %vm3162_vm13 = vmor %vm1524_vm9, %vm1525_vm12  ;;  %v1240_v23 = vpop.f32.mrf.mxu3 }
 0x7bc   : > { %v1521_v21 = vsub.f32 1.0, %v1520_v11  ;;  %v1896_v11 = vld [vmem:[%s3262_s4 + $0xb8] sm:$0xff] }
 0x7bd   : > { %v1507_v26 = vmul.f32 %v3126_v48, %v1506_v27  ;;  %v1546_v43 = vor.u32 1.1754944e-38, %v1545_v16  ;;  %vm1544_vm1 = vcmp.eq.f32.partialorder %v1543_v13, 8.507059e+37  ;;  %v685_v27 = vpop.permute.xlu1 %684 }
 0x7be   : > { %v1522_v19 = vmul.f32 %v3128_v56, %v1521_v21  ;;  %v680_v21 = vpop.permute.xlu0 %679 }
 0x7bf   : > { %v2260_v3 = vpop.eup %2259  ;;  %v1508_v50 = vadd.f32 %v3126_v48, %v1507_v26 }
 0x7c0   : > { %v3130_v6 = vpop.eup %2261  ;;  %v1503_v7 = vadd.f32 1.0, %v2260_v3  ;;  %v1523_v2 = vadd.f32 %v3128_v56, %v1522_v19  ;;  %v1891_v3 = vld [vmem:[%s3262_s4 + $0x90] sm:$0xff] }
 0x7c1   : > { %v1535_v8 = vmul.f32 %v3130_v6, %v3123_v4  ;;  %vm1540_vm6 = vweird.f32 %v3130_v6  ;;  %v1512_v59 = vsel %vm1511_vm4, %v3126_v48, %v1508_v50  ;;  %v1890_v48 = vld [vmem:[%s3262_s4 + $0x88] sm:$0xff] }
 0x7c2   : > { %2263 = vrcp.f32 %v1503_v7  ;;  %v1560_v12 = vand.u32 2147483648, %v1503_v7  ;;  %v1558_v32 = vand.u32 2147483647, %v1503_v7  ;;  %vm3149_vm8 = vmor %vm1539_vm3, %vm1540_vm6  ;;  %vm1554_vm11 = vweird.f32 %v1503_v7 }
 0x7c3   : > { %v1536_v14 = vsub.f32 1.0, %v1535_v8  ;;  %2265 = vtanh.f32 %v1464_v15  ;;  %v1527_v53 = vsel %vm3162_vm13, %v3128_v56, %v1523_v2  ;;  %vm1514_vm6 = vcmp.eq.f32.partialorder %v1513_v45, 8.507059e+37  ;;  %v1895_v8 = vld [vmem:[%s3262_s4 + $0xb0] sm:$0xff]  ;;  %v1243_v24 = vpop.f32.mrf.mxu3  ;;  %v2273_v2 = vld [vmem:[%s2439_s13] ss:$0 sm:$0xff]  ;;  %s1919_s13 = sshll.u32 %s2404_s25, 5 }
 0x7c4   : > { %2267 = vtanh.f32 %v1467_v20  ;;  %v1561_v35 = vor.u32 1.1754944e-38, %v1560_v12  ;;  %vm1559_vm14 = vcmp.eq.f32.partialorder %v1558_v32, 8.507059e+37  ;;  %v1532_v61 = vsel %vm1529_vm0, %v1531_v57, %v1527_v53  ;;  %s1707_s20 = scalar_lea.hbm %s3264_s6, %s1919_s13  ;;  %s1696_s25 = scalar_lea.sflag [#allocation4], %s253_s17 }
 0x7c5   : > { %v1537_v28 = vmul.f32 %v3130_v6, %v1536_v14  ;;  %2269 = vtanh.f32 %v1470_v22  ;;  %v1517_v0 = vsel %vm1514_vm6, %v1516_v62, %v1512_v59  ;;  %v690_v22 = vpop.permute.xlu2 %689  ;;  %v1170_v19 = vpop.permute.xlu1 %1169  ;;  %v755_v32 = vadd.f32 %v3111_v38, %v685_v27  ;;  %s1710_s29 = sshll.u32 %s1707_s20, 4  ;;  %s1711_s29 = int_to_ptr.hbm [resolvable:$true] %s1710_s29 }
 0x7c6   : > { %2271 = vtanh.f32 %v1461_v25  ;;  %v1241_v25 = vadd.f32 %v1240_v23, %v1170_v19  ;;  %v758_v38 = vadd.f32 %v3113_v39, %v690_v22  ;;  %s2288_s26 = sshra.s32 %s1711_s29, 4  ;;  %s2289_s26 = int_to_ptr.hbm [resolvable:$true] %s2288_s26 }
 0x7c7   : > { %v1538_v30 = vadd.f32 %v3130_v6, %v1537_v28  ;;  %s2290_s9 = scalar_lea.hbm %s2289_s26, 32  ;;  %p2295_p0 = scmp.lt.s32.totalorder %s2289_s26, %s3264_s6 }
 0x7c8   : > { %v2264_v9 = vpop.eup %2263  ;;  %p2291_p11 = scmp.ne.s32.totalorder %s2289_s26, %s2290_s9  ;;  %p2296_p1 = scmp.lt.s32.totalorder %s2294_s18, %s2290_s9 }
 0x7c9   : > { %v1550_v18 = vmul.f32 %v2264_v9, %v1503_v7  ;;  %vm1555_vm5 = vweird.f32 %v2264_v9  ;;  %v2266_v33 = vpop.eup %2265  ;;  %v1542_v44 = vsel %vm3149_vm8, %v3130_v6, %v1538_v30  ;;  %v1893_v6 = vld [vmem:[%s3262_s4 + $0xa0] sm:$0xff]  ;;  %v1894_v7 = vld [vmem:[%s3262_s4 + $0xa8] sm:$0xff] }
 0x7ca   : > { %v2268_v46 = vpop.eup %2267  ;;  %vm1556_vm15 = vmor %vm1554_vm11, %vm1555_vm5  ;;  %v1547_v55 = vsel %vm1544_vm1, %v1546_v43, %v1542_v44  ;;  %v1565_v1 = vmul.f32 %v2266_v33, %v1532_v61  ;;  %p2292_p12 = pnand %p2291_p11, %p2421_p5  ;;  %p2297_p2 = por %p2296_p1, %p2295_p0 }
 0x7cb   : > { %v1551_v29 = vsub.f32 1.0, %v1550_v18  ;;  %v2270_v37 = vpop.eup %2269  ;;  %v1566_v63 = vmul.f32 %v2268_v46, %v1547_v55  ;;  %v1246_v14 = vpop.f32.mrf.mxu3 }
 0x7cc   : > { %v2272_v4 = vpop.eup %2271  ;;  %p2293_p13 = pneg %p2292_p12 }
 0x7cd   : > { %v1552_v31 = vmul.f32 %v2264_v9, %v1551_v29  ;;  %v1564_v56 = vmul.f32 %v2272_v4, %v1517_v0  ;;  %v1175_v10 = vpop.permute.xlu2 %1174  ;;  %v752_v29 = vadd.f32 %v3109_v36, %v680_v21  ;;  %v1185_v34 = vpop.permute.xlu1 %1184 }
 0x7ce   : > { %v1244_v41 = vadd.f32 %v1243_v24, %v1175_v10  ;;  %p2298_p3 = pnand %p2297_p2, %p2293_p13 }
 0x7cf   : > { %v1553_v47 = vadd.f32 %v2264_v9, %v1552_v31  ;;  %v1292_v13 = vadd.f32 %v1241_v25, %v752_v29 }
 0x7d0   : > { %v1293_v46 = vadd.f32 %v1244_v41, %v755_v32 }
 0x7d1   : > { %v1557_v52 = vsel %vm1556_vm15, %v2264_v9, %v1553_v47  ;;  %v695_v9 = vpop.permute.xlu0 %694 }
 0x7d2   : > { %v1562_v54 = vsel %vm1559_vm14, %v1561_v35, %v1557_v52 }
 0x7d3   : > { %v1567_v58 = vmul.f32 %v2270_v37, %v1562_v54  ;;  %v1249_v17 = vpop.f32.mrf.mxu3  ;;  %v761_v54 = vadd.f32 %v3115_v40, %v695_v9 }
 0x7d4   : > { %v1250_v52 = vadd.f32 %v1249_v17, %v1185_v34 }
 0x7d5   : > { %1658 = vmatpush.msrb.mxu3 %v1567_v58  ;;  %v1605_v30 = vpop.permute.xlu2 %1604  ;;  %v1615_v37 = vpop.permute.xlu1 %1614 }
 0x7d6   : > { %v1295_v57 = vadd.f32 %v1250_v52, %v761_v54 }
 0x7d7   : > { %1659 = vmatpush.msrb.mxu3 %v1566_v63 }
 0x7d9   : > { %1660 = vmatpush.msrb.mxu3 %v1565_v1  ;;  %v1180_v26 = vpop.permute.xlu0 %1179 }
 0x7da   : > { %v1247_v49 = vadd.f32 %v1246_v14, %v1180_v26 }
 0x7db   : > { %1661 = vmatpush.msrb.mxu3 %v1564_v56 }
 0x7dc   : > { %1905 = vmatmul.msk.f32.vlgmr.msrb.gmra.mxu3 %vm697_vm7, %v1889_v60  ;;  %v1294_v43 = vadd.f32 %v1247_v49, %v758_v38 }
 0x7dd   : > { %v1620_v39 = vpop.permute.xlu2 %1619 }
 0x7e1   : > { %v1610_v36 = vpop.permute.xlu0 %1609 }
 0x7e4   : > { %1906 = vmatmul.msk.f32.gmra.mxu3 %vm697_vm7, %v1890_v48 }
 0x7ec   : > { %1907 = vmatmul.msk.f32.gmra.mxu3 %vm697_vm7, %v1891_v3 }
 0x7f4   : > { %1908 = vmatmul.msk.f32.gmra.mxu3 %vm697_vm7, %v1892_v5 }
 0x7fc   : > { %1909 = vmatmul.msk.f32.gmra.mxu3 %vm697_vm7, %v1893_v6 }
 0x804   : > { %1910 = vmatmul.msk.f32.gmra.mxu3 %vm697_vm7, %v1894_v7 }
 0x80c   : > { %1911 = vmatmul.msk.f32.gmra.mxu3 %vm697_vm7, %v1895_v8 }
 0x814   : > { %1912 = vmatmul.msk.f32.gmra.mxu3 %vm697_vm7, %v1896_v11 }
 0x85f   : > { %v1663_v15 = vpop.f32.mrf.mxu3 }
 0x867   : > { %v1665_v20 = vpop.f32.mrf.mxu3 }
 0x86f   : > { %v1667_v28 = vpop.f32.mrf.mxu3 }
 0x877   : > { %v1669_v18 = vpop.f32.mrf.mxu3 }
 0x87f   : > { %v1671_v12 = vpop.f32.mrf.mxu3 }
 0x880   : > { %v1672_v16 = vadd.f32 %v1671_v12, %v1605_v30 }
 0x882   : > { %v1683_v31 = vadd.f32 %v1672_v16, %v1292_v13 }
 0x884   : > { %v1687_v33 = vmul.f32 %v2273_v2, %v1683_v31 }
 0x886   : > { %1691 = vst [vmem:[%s3216_s15] sm:$0xff] %v1687_v33 }
 0x887   : > { %v1674_v42 = vpop.f32.mrf.mxu3 }
 0x888   : > { %v1675_v47 = vadd.f32 %v1674_v42, %v1610_v36 }
 0x88a   : > { %v1684_v44 = vadd.f32 %v1675_v47, %v1293_v46 }
 0x88c   : > { %v1688_v50 = vmul.f32 %v2273_v2, %v1684_v44 }
 0x88e   : > { %1692 = vst [vmem:[%s3216_s15 + $0x8] sm:$0xff] %v1688_v50 }
 0x88f   : > { %v1677_v35 = vpop.f32.mrf.mxu3 }
 0x890   : > { %v1678_v45 = vadd.f32 %v1677_v35, %v1615_v37 }
 0x892   : > { %v1685_v51 = vadd.f32 %v1678_v45, %v1294_v43 }
 0x894   : > { %v1689_v53 = vmul.f32 %v2273_v2, %v1685_v51 }
 0x896   : > { %1693 = vst [vmem:[%s3216_s15 + $0x10] sm:$0xff] %v1689_v53 }
 0x897   : > { %v1680_v55 = vpop.f32.mrf.mxu3 }
 0x898   : > { %v1681_v58 = vadd.f32 %v1680_v55, %v1620_v39 }
 0x89a   : > { %v1686_v59 = vadd.f32 %v1681_v58, %v1295_v57 }
 0x89c   : > { %v1690_v61 = vmul.f32 %v2273_v2, %v1686_v59 }
 0x89e   : > { %1694 = vst [vmem:[%s3216_s15 + $0x18] sm:$0xff] %v1690_v61 }
 0x89f   : > { %2301 = shalt.err (!%p2298_p3)
}
 0x8a0   : > { %s2346_s17 = smov 128   ;;  %s2347_s15 = smov 8  }
 0x8a1   : > { %1928 = dma.vmem_to_hbm [thread:$0]  (%p2421_p5), %s1709_s28, 512, %s1711_s29, %s1696_s25, %s2346_s17, %s2346_s17, %s2347_s15  }
 0x8a2 PF: > { %p1934_p4 = scmp.ge.s32.totalorder %s2336_s24, 2  ;;  %s1725_s13 = sand.u32 1, %s2324_s21  }
 0x8a3   : > { %s1726_s16 = scalar_lea.sflag [#allocation4], %s1725_s13 }
 0x8a4   : > { %p1931_p7 = pnand %p1934_p4, %p2425_p6 }
 0x8a6   : > { %p1932_p8 = pneg %p1931_p7 }
 0x8a8   : > { %2319 = dma.done.wait (%p1932_p8), %s1726_s16, 512  }
 0x8a9   : > { %2321 = vsyncadd (%p1932_p8), %s1726_s16, 4294966784  ;;  %p16_p9 = scmp.ge.s32.totalorder %s2408_s27, 4   ;;  %s3279_s21 = smov %s2328_s22 }
 0x8aa   : > { %s3280_s22 = smov %s2332_s23  ;;  %s3281_s23 = smov %s2419_s30 }
 0x8ab   : > { %s3282_s24 = smov %s2408_s27  ;;  %18 = sbr.rel (!%p16_p9) target bundleno = 3 (0x3), region = 90 }
 0x8b0   :  { %1732 = vsyncpa [#allocation4], 1 }
 0x8b1   :  { %1734 = vsyncpa [#allocation4 + $0x1], 1 }

</bundles_post_ra>
